<compile_context>
chip_gen: v7x
topology: tpu7x:2x2x1
jax: 0.10.0
libtpu: 0.0.40
codegen_flags: <defaults>
</compile_context>

<pallas_src>
import functools

import jax
import jax.numpy as jnp
from jax import lax
from jax.experimental import pallas as pl
from jax.experimental.pallas import tpu as pltpu


def _round_up(x, m):
    return ((x + m - 1) // m) * m


# ----------------------------------------------------------------------------
# Fused Conv3x3(pad=1) + MaxPool2x2 + bias + ReLU kernel (one batch / step)
# ----------------------------------------------------------------------------
def _conv_pool_kernel(xe_ref, xo_ref, w_ref, b_ref, o_ref, *, H, W, C_in):
    """xe_ref/xo_ref: (1, H+2, Wp+1, C_in) bf16 even/odd columns of the padded
                      NHWC input (Wp = W//2).
       w_ref:         (9*C_in, C_pad) bf16 conv weight, K order = (kh, kw, c).
       b_ref:         (1, C_pad) f32 bias (zero in padded channels).
       o_ref:         (1, Hp, Wp, C_out) bf16 pooled+ReLU'd features (compact)."""
    Hp, Wp = H // 2, W // 2
    C_pad = w_ref.shape[-1]
    C_out = o_ref.shape[-1]

    xe = xe_ref[0]                       # (H+2, Wp+1, C_in), padded cols 0,2,4,...
    xo = xo_ref[0]                       # (H+2, Wp+1, C_in), padded cols 1,3,5,...

    # Column-window views (one sublane slice each, reused by every kh).
    xe0 = xe[:, 0:Wp, :]                 # padded col 2*wp
    xe1 = xe[:, 1:Wp + 1, :]             # padded col 2*wp + 2
    xo0 = xo[:, 0:Wp, :]                 # padded col 2*wp + 1
    xo1 = xo[:, 1:Wp + 1, :]             # padded col 2*wp + 3

    def build_lhs(c_kw0, c_kw1, c_kw2):
        # Lane (K) order = (kh, kw, c_in), matching the host-side weight layout.
        kw_cat = jnp.concatenate([c_kw0, c_kw1, c_kw2], axis=-1)   # (H+2, Wp, 3*C_in)
        rows = [kw_cat[kh:kh + H].reshape(H * Wp, 3 * C_in) for kh in range(3)]
        return jnp.concatenate(rows, axis=-1)                      # (H*Wp, 9*C_in)

    lhs_even = build_lhs(xe0, xo0, xe1)          # conv outputs at w = 2*wp
    lhs_odd = build_lhs(xo0, xe1, xo1)           # conv outputs at w = 2*wp + 1
    lhs = jnp.concatenate([lhs_even, lhs_odd], axis=0)             # (H*W, 9*C_in)

    # Single MXU matmul: K = 9*C_in, lane-dense N = C_pad, f32 accumulate.
    y = jnp.dot(lhs, w_ref[...], preferred_element_type=jnp.float32)

    # 2x2 max pool on values (aligned slices only; no scratch round-trip).
    half = H * Wp
    m1 = jnp.maximum(y[:half], y[half:])                 # pool over w
    m2 = m1.reshape(Hp, 2 * Wp, C_pad)
    pooled = jnp.maximum(m2[:, :Wp, :], m2[:, Wp:, :])   # pool over h -> (Hp, Wp, C_pad)

    # Bias + ReLU after the pool (exact: per-channel bias, monotone ReLU).
    act = jnp.maximum(pooled + b_ref[...], 0.0)

    # Compact feature writeback: only the real channels leave the kernel.
    o_ref[...] = act[None, :, :, :C_out].astype(o_ref.dtype)


# ----------------------------------------------------------------------------
# K-tiled matmul + bias kernel for the final Linear layer
# ----------------------------------------------------------------------------
def _fc_kernel(a_ref, w_ref, b_ref, o_ref, acc_ref):
    k = pl.program_id(0)

    @pl.when(k == 0)
    def _():
        acc_ref[...] = jnp.zeros_like(acc_ref)

    acc_ref[...] += jnp.dot(a_ref[...], w_ref[...],
                            preferred_element_type=jnp.float32)
    o_ref[...] = acc_ref[...] + b_ref[...]


# ----------------------------------------------------------------------------
# Forward pass (thin JAX glue around the Pallas kernels)
# ----------------------------------------------------------------------------
def cnn_forward(x, params):
    """x: (B, C_in, H, W) NCHW float32 (PyTorch convention) -> (B, num_classes)."""
    B, C_in, H, W = x.shape
    assert H % 2 == 0 and W % 2 == 0, "2x2 max-pool needs even H and W"
    conv_w = params["conv_w"]            # (C_out, C_in, 3, 3) PyTorch layout
    conv_b = params["conv_b"]            # (C_out,)
    fc_w = params["fc_w"]                # (num_classes, C_out*Hp*Wp) PyTorch layout
    fc_b = params["fc_b"]                # (num_classes,)
    C_out = conv_w.shape[0]
    NC = fc_w.shape[0]
    Hp, Wp = H // 2, W // 2
    C_pad = _round_up(C_out, 128)        # lane-dense conv matmul output width

    # NHWC bf16 input (single cast), halo pad, and even/odd column split so the
    # kernel's w-pool needs no strided slicing.
    x_nhwc = jnp.transpose(x, (0, 2, 3, 1)).astype(jnp.bfloat16)
    xp = jnp.pad(x_nhwc, ((0, 0), (1, 1), (1, 1), (0, 0)))      # (B, H+2, W+2, C_in)
    xe = xp[:, :, 0::2, :]                                      # (B, H+2, Wp+1, C_in)
    xo = xp[:, :, 1::2, :]
    # TODO(synk): do the halo zero-fill inside the kernel to avoid the padded HBM copy.

    # Conv taps -> (9*C_in, C_pad) bf16, K order (kh, kw, c); padded channels zero.
    w_conv = jnp.transpose(conv_w, (2, 3, 1, 0)).reshape(9 * C_in, C_out)
    w_conv = jnp.pad(w_conv, ((0, 0), (0, C_pad - C_out))).astype(jnp.bfloat16)
    b_conv = jnp.pad(conv_b, (0, C_pad - C_out)).reshape(1, C_pad).astype(jnp.float32)

    conv_kernel = functools.partial(_conv_pool_kernel, H=H, W=W, C_in=C_in)
    feat = pl.pallas_call(
        conv_kernel,
        out_shape=jax.ShapeDtypeStruct((B, Hp, Wp, C_out), jnp.bfloat16),
        grid_spec=pltpu.PrefetchScalarGridSpec(
            num_scalar_prefetch=0,
            grid=(B,),
            in_specs=[
                pl.BlockSpec((1, H + 2, Wp + 1, C_in), lambda b: (b, 0, 0, 0)),
                pl.BlockSpec((1, H + 2, Wp + 1, C_in), lambda b: (b, 0, 0, 0)),
                pl.BlockSpec((9 * C_in, C_pad), lambda b: (0, 0)),
                pl.BlockSpec((1, C_pad), lambda b: (0, 0)),
            ],
            out_specs=pl.BlockSpec((1, Hp, Wp, C_out), lambda b: (b, 0, 0, 0)),
        ),
        compiler_params=pltpu.CompilerParams(
            dimension_semantics=("parallel",)),   # B axis shards across v7x TCs
    )(xe, xo, w_conv, b_conv)
    # TODO(synk): add an output-row-block grid axis (halo'd input tiles) to bound
    # per-step VMEM on v7x for large H*W and to deepen the pipeline when B is small.

    # --- Flatten + Linear (compact weight, K-tiled reduction) ----------------
    F = Hp * Wp * C_out
    # Permute PyTorch (c, hp, wp) flatten order to our (hp, wp, c) feature order.
    w_fc = fc_w.reshape(NC, C_out, Hp, Wp).transpose(2, 3, 1, 0)
    w_fc = w_fc.reshape(F, NC).astype(jnp.bfloat16)
    b_fc = fc_b.reshape(1, NC).astype(jnp.float32)
    feat2 = feat.reshape(B, F)                                   # bf16, compact

    TK = F if F <= 2048 else 2048
    F_pad = _round_up(F, TK)
    if F_pad != F:                       # zero rows contribute nothing
        feat2 = jnp.pad(feat2, ((0, 0), (0, F_pad - F)))
        w_fc = jnp.pad(w_fc, ((0, F_pad - F), (0, 0)))

    logits = pl.pallas_call(
        _fc_kernel,
        out_shape=jax.ShapeDtypeStruct((B, NC), jnp.float32),
        grid_spec=pltpu.PrefetchScalarGridSpec(
            num_scalar_prefetch=0,
            grid=(F_pad // TK,),
            in_specs=[
                pl.BlockSpec((B, TK), lambda k: (0, k)),
                pl.BlockSpec((TK, NC), lambda k: (k, 0)),
                pl.BlockSpec((1, NC), lambda k: (0, 0)),
            ],
            out_specs=pl.BlockSpec((B, NC), lambda k: (0, 0)),
            scratch_shapes=[pltpu.VMEM((B, NC), jnp.float32)],
        ),
        compiler_params=pltpu.CompilerParams(
            dimension_semantics=("arbitrary",)),
    )(feat2, w_fc, b_fc)
    return logits


# ----------------------------------------------------------------------------
# Pure-JAX reference (f32) for a loose numerical check
# ----------------------------------------------------------------------------
def cnn_forward_ref(x, params):
    out = lax.conv_general_dilated(
        x, params["conv_w"], window_strides=(1, 1), padding="SAME",
        dimension_numbers=("NCHW", "OIHW", "NCHW"))
    out = jnp.maximum(out + params["conv_b"][None, :, None, None], 0.0)
    out = lax.reduce_window(out, -jnp.inf, lax.max,
                            (1, 1, 2, 2), (1, 1, 2, 2), "VALID")
    feat = out.reshape(out.shape[0], -1)                 # PyTorch (C, Hp, Wp) flatten
    return feat @ params["fc_w"].T + params["fc_b"]


# ----------------------------------------------------------------------------
# Deterministic parameter init (PyTorch layouts / flatten order)
# ----------------------------------------------------------------------------
def init_params(key, c_in, c_out, h, w, num_classes):
    k1, k2, k3, k4 = jax.random.split(key, 4)
    fan_conv = c_in * 9
    fan_fc = c_out * (h // 2) * (w // 2)
    return {
        "conv_w": jax.random.normal(k1, (c_out, c_in, 3, 3), jnp.float32)
                  * (2.0 / fan_conv) ** 0.5,
        "conv_b": jax.random.normal(k2, (c_out,), jnp.float32) * 0.01,
        "fc_w": jax.random.normal(k3, (num_classes, fan_fc), jnp.float32)
                * (2.0 / fan_fc) ** 0.5,
        "fc_b": jax.random.normal(k4, (num_classes,), jnp.float32) * 0.01,
    }


if __name__ == "__main__":
    B, C_in, H, W = 2, 4, 16, 16
    C_out, num_classes = 8, 10

    key = jax.random.PRNGKey(0)
    kx, kp = jax.random.split(key)
    x = jax.random.normal(kx, (B, C_in, H, W), jnp.float32)   # NCHW like PyTorch
    params = init_params(kp, C_in, C_out, H, W, num_classes)

    logits = jax.jit(cnn_forward)(x, params)
    logits = jax.block_until_ready(logits)
    assert logits.shape == (B, num_classes)
    assert bool(jnp.all(jnp.isfinite(logits)))

    # Loose check against an f32 XLA reference (kernel uses bf16 operands).
    ref = cnn_forward_ref(x, params)
    err = float(jnp.max(jnp.abs(logits - ref)))
    tol = 0.1 + 5e-2 * float(jnp.max(jnp.abs(ref)))
    assert err < tol, f"max |err| {err} exceeds tol {tol}"

    print("KERNEL_OK")
</pallas_src>

<mosaic_0001>
module attributes {stable_mosaic.version = 11 : i64} {
  func.func @_conv_pool_kernel(%arg0: i32, %arg1: memref<1x18x9x4xbf16, #tpu.memory_space<vmem>>, %arg2: memref<1x18x9x4xbf16, #tpu.memory_space<vmem>>, %arg3: memref<36x128xbf16, #tpu.memory_space<vmem>>, %arg4: memref<1x128xf32, #tpu.memory_space<vmem>>, %arg5: memref<1x8x8x8xbf16, #tpu.memory_space<vmem>>) attributes {dimension_semantics = [#tpu.dimension_semantics<parallel>], iteration_bounds = array<i64: 2>, scalar_prefetch = 0 : i64, scratch_operands = 0 : i64, tpu.core_type = #tpu.core_type<tc>, window_params = [{transform_indices = @transform_0, window_bounds = array<i64: 1, 18, 9, 4>}, {transform_indices = @transform_1, window_bounds = array<i64: 1, 18, 9, 4>}, {pipeline_mode = #tpu.pipeline_mode<synchronous>, transform_indices = @transform_2, window_bounds = array<i64: 36, 128>}, {pipeline_mode = #tpu.pipeline_mode<synchronous>, transform_indices = @transform_3, window_bounds = array<i64: 1, 128>}, {transform_indices = @transform_4, window_bounds = array<i64: 1, 8, 8, 8>}]} {
    %c0 = arith.constant 0 : index
    %c0_0 = arith.constant 0 : index
    %c0_1 = arith.constant 0 : index
    %c0_2 = arith.constant 0 : index
    %0 = vector.load %arg1[%c0, %c0_0, %c0_1, %c0_2] : memref<1x18x9x4xbf16, #tpu.memory_space<vmem>>, vector<1x18x9x4xbf16>
    %1 = vector.shape_cast %0 : vector<1x18x9x4xbf16> to vector<18x9x4xbf16>
    %c0_3 = arith.constant 0 : index
    %c0_4 = arith.constant 0 : index
    %c0_5 = arith.constant 0 : index
    %c0_6 = arith.constant 0 : index
    %2 = vector.load %arg2[%c0_3, %c0_4, %c0_5, %c0_6] : memref<1x18x9x4xbf16, #tpu.memory_space<vmem>>, vector<1x18x9x4xbf16>
    %3 = vector.shape_cast %2 : vector<1x18x9x4xbf16> to vector<18x9x4xbf16>
    %4 = vector.extract_strided_slice %1 {offsets = [0, 0, 0], sizes = [18, 8, 4], strides = [1, 1, 1]} : vector<18x9x4xbf16> to vector<18x8x4xbf16>
    %5 = vector.extract_strided_slice %1 {offsets = [0, 1, 0], sizes = [18, 8, 4], strides = [1, 1, 1]} : vector<18x9x4xbf16> to vector<18x8x4xbf16>
    %6 = vector.extract_strided_slice %3 {offsets = [0, 0, 0], sizes = [18, 8, 4], strides = [1, 1, 1]} : vector<18x9x4xbf16> to vector<18x8x4xbf16>
    %7 = vector.extract_strided_slice %3 {offsets = [0, 1, 0], sizes = [18, 8, 4], strides = [1, 1, 1]} : vector<18x9x4xbf16> to vector<18x8x4xbf16>
    %8 = tpu.concatenate %4, %6, %5 in 2 : vector<18x8x4xbf16>, vector<18x8x4xbf16>, vector<18x8x4xbf16> -> vector<18x8x12xbf16>
    %9 = vector.extract_strided_slice %8 {offsets = [0, 0, 0], sizes = [16, 8, 12], strides = [1, 1, 1]} : vector<18x8x12xbf16> to vector<16x8x12xbf16>
    %10 = vector.shape_cast %9 : vector<16x8x12xbf16> to vector<128x12xbf16>
    %11 = vector.extract_strided_slice %8 {offsets = [1, 0, 0], sizes = [16, 8, 12], strides = [1, 1, 1]} : vector<18x8x12xbf16> to vector<16x8x12xbf16>
    %12 = vector.shape_cast %11 : vector<16x8x12xbf16> to vector<128x12xbf16>
    %13 = vector.extract_strided_slice %8 {offsets = [2, 0, 0], sizes = [16, 8, 12], strides = [1, 1, 1]} : vector<18x8x12xbf16> to vector<16x8x12xbf16>
    %14 = vector.shape_cast %13 : vector<16x8x12xbf16> to vector<128x12xbf16>
    %15 = tpu.concatenate %10, %12, %14 in 1 : vector<128x12xbf16>, vector<128x12xbf16>, vector<128x12xbf16> -> vector<128x36xbf16>
    %16 = tpu.concatenate %6, %5, %7 in 2 : vector<18x8x4xbf16>, vector<18x8x4xbf16>, vector<18x8x4xbf16> -> vector<18x8x12xbf16>
    %17 = vector.extract_strided_slice %16 {offsets = [0, 0, 0], sizes = [16, 8, 12], strides = [1, 1, 1]} : vector<18x8x12xbf16> to vector<16x8x12xbf16>
    %18 = vector.shape_cast %17 : vector<16x8x12xbf16> to vector<128x12xbf16>
    %19 = vector.extract_strided_slice %16 {offsets = [1, 0, 0], sizes = [16, 8, 12], strides = [1, 1, 1]} : vector<18x8x12xbf16> to vector<16x8x12xbf16>
    %20 = vector.shape_cast %19 : vector<16x8x12xbf16> to vector<128x12xbf16>
    %21 = vector.extract_strided_slice %16 {offsets = [2, 0, 0], sizes = [16, 8, 12], strides = [1, 1, 1]} : vector<18x8x12xbf16> to vector<16x8x12xbf16>
    %22 = vector.shape_cast %21 : vector<16x8x12xbf16> to vector<128x12xbf16>
    %23 = tpu.concatenate %18, %20, %22 in 1 : vector<128x12xbf16>, vector<128x12xbf16>, vector<128x12xbf16> -> vector<128x36xbf16>
    %24 = tpu.concatenate %15, %23 in 0 : vector<128x36xbf16>, vector<128x36xbf16> -> vector<256x36xbf16>
    %c0_7 = arith.constant 0 : index
    %c0_8 = arith.constant 0 : index
    %25 = vector.load %arg3[%c0_7, %c0_8] : memref<36x128xbf16, #tpu.memory_space<vmem>>, vector<36x128xbf16>
    %cst = arith.constant dense<0.000000e+00> : vector<256x128xf32>
    %26 = tpu.matmul %24, %25, %cst {dimension_numbers = #tpu.dot_dimension_numbers<[1], [0], [0], [1], [0, 0, 1, 1], [], []>} : vector<256x36xbf16>, vector<36x128xbf16>, vector<256x128xf32> -> vector<256x128xf32>
    %27 = vector.extract_strided_slice %26 {offsets = [0, 0], sizes = [128, 128], strides = [1, 1]} : vector<256x128xf32> to vector<128x128xf32>
    %28 = vector.extract_strided_slice %26 {offsets = [128, 0], sizes = [128, 128], strides = [1, 1]} : vector<256x128xf32> to vector<128x128xf32>
    %29 = arith.maximumf %27, %28 : vector<128x128xf32>
    %30 = vector.shape_cast %29 : vector<128x128xf32> to vector<8x16x128xf32>
    %31 = vector.extract_strided_slice %30 {offsets = [0, 0, 0], sizes = [8, 8, 128], strides = [1, 1, 1]} : vector<8x16x128xf32> to vector<8x8x128xf32>
    %32 = vector.extract_strided_slice %30 {offsets = [0, 8, 0], sizes = [8, 8, 128], strides = [1, 1, 1]} : vector<8x16x128xf32> to vector<8x8x128xf32>
    %33 = arith.maximumf %31, %32 : vector<8x8x128xf32>
    %c0_9 = arith.constant 0 : index
    %c0_10 = arith.constant 0 : index
    %34 = vector.load %arg4[%c0_9, %c0_10] : memref<1x128xf32, #tpu.memory_space<vmem>>, vector<1x128xf32>
    %35 = vector.shape_cast %34 : vector<1x128xf32> to vector<1x1x128xf32>
    %36 = vector.broadcast %35 : vector<1x1x128xf32> to vector<8x8x128xf32>
    %37 = arith.addf %33, %36 : vector<8x8x128xf32>
    %cst_11 = arith.constant 0.000000e+00 : f32
    %38 = vector.broadcast %cst_11 : f32 to vector<8x8x128xf32>
    %39 = arith.maximumf %37, %38 : vector<8x8x128xf32>
    %40 = vector.extract_strided_slice %39 {offsets = [0, 0, 0], sizes = [8, 8, 8], strides = [1, 1, 1]} : vector<8x8x128xf32> to vector<8x8x8xf32>
    %41 = vector.shape_cast %40 : vector<8x8x8xf32> to vector<1x8x8x8xf32>
    %42 = arith.truncf %41 : vector<1x8x8x8xf32> to vector<1x8x8x8xbf16>
    %c0_12 = arith.constant 0 : index
    %c0_13 = arith.constant 0 : index
    %c0_14 = arith.constant 0 : index
    %c0_15 = arith.constant 0 : index
    %43 = vector.load %arg5[%c0_12, %c0_13, %c0_14, %c0_15] : memref<1x8x8x8xbf16, #tpu.memory_space<vmem>>, vector<1x8x8x8xbf16>
    tpu.vector_store %arg5[%c0_12, %c0_13, %c0_14, %c0_15], %42 {strides = array<i32>} : memref<1x8x8x8xbf16, #tpu.memory_space<vmem>>, vector<1x8x8x8xbf16>,
    return
  }
  func.func @transform_0(%arg0: i32) -> (i32, i32, i32, i32) {
    %c0_i32 = arith.constant 0 : i32
    %c0_i32_0 = arith.constant 0 : i32
    %c0_i32_1 = arith.constant 0 : i32
    %c0_i32_2 = arith.constant 0 : i32
    return %arg0, %c0_i32, %c0_i32_0, %c0_i32_1 : i32, i32, i32, i32
  }
  func.func @transform_1(%arg0: i32) -> (i32, i32, i32, i32) {
    %c0_i32 = arith.constant 0 : i32
    %c0_i32_0 = arith.constant 0 : i32
    %c0_i32_1 = arith.constant 0 : i32
    %c0_i32_2 = arith.constant 0 : i32
    return %arg0, %c0_i32, %c0_i32_0, %c0_i32_1 : i32, i32, i32, i32
  }
  func.func @transform_2(%arg0: i32) -> (i32, i32) {
    %c0_i32 = arith.constant 0 : i32
    %c0_i32_0 = arith.constant 0 : i32
    %c0_i32_1 = arith.constant 0 : i32
    return %c0_i32, %c0_i32_0 : i32, i32
  }
  func.func @transform_3(%arg0: i32) -> (i32, i32) {
    %c0_i32 = arith.constant 0 : i32
    %c0_i32_0 = arith.constant 0 : i32
    %c0_i32_1 = arith.constant 0 : i32
    return %c0_i32, %c0_i32_0 : i32, i32
  }
  func.func @transform_4(%arg0: i32) -> (i32, i32, i32, i32) {
    %c0_i32 = arith.constant 0 : i32
    %c0_i32_0 = arith.constant 0 : i32
    %c0_i32_1 = arith.constant 0 : i32
    %c0_i32_2 = arith.constant 0 : i32
    return %arg0, %c0_i32, %c0_i32_0, %c0_i32_1 : i32, i32, i32, i32
  }
}

module attributes {stable_mosaic.version = 11 : i64} {
  func.func @_fc_kernel(%arg0: i32, %arg1: memref<2x512xbf16, #tpu.memory_space<vmem>>, %arg2: memref<512x10xbf16, #tpu.memory_space<vmem>>, %arg3: memref<1x10xf32, #tpu.memory_space<vmem>>, %arg4: memref<2x10xf32, #tpu.memory_space<vmem>>, %arg5: memref<2x10xf32, #tpu.memory_space<vmem>>) attributes {dimension_semantics = [#tpu.dimension_semantics<arbitrary>], iteration_bounds = array<i64: 1>, scalar_prefetch = 0 : i64, scratch_operands = 1 : i64, tpu.core_type = #tpu.core_type<tc>, window_params = [{transform_indices = @transform_0, window_bounds = array<i64: 2, 512>}, {transform_indices = @transform_1, window_bounds = array<i64: 512, 10>}, {pipeline_mode = #tpu.pipeline_mode<synchronous>, transform_indices = @transform_2, window_bounds = array<i64: 1, 10>}, {pipeline_mode = #tpu.pipeline_mode<synchronous>, transform_indices = @transform_3, window_bounds = array<i64: 2, 10>}]} {
    %c0_i32 = arith.constant 0 : i32
    %0 = arith.cmpi eq, %arg0, %c0_i32 : i32
    %1 = arith.extui %0 : i1 to i32
    %c0_i32_0 = arith.constant 0 : i32
    %2 = arith.cmpi ne, %1, %c0_i32_0 : i32
    scf.if %2 {
      %cst_14 = arith.constant 0.000000e+00 : f32
      %14 = vector.broadcast %cst_14 : f32 to vector<2x10xf32>
      %c0_15 = arith.constant 0 : index
      %c0_16 = arith.constant 0 : index
      %15 = vector.load %arg5[%c0_15, %c0_16] : memref<2x10xf32, #tpu.memory_space<vmem>>, vector<2x10xf32>
      tpu.vector_store %arg5[%c0_15, %c0_16], %14 {strides = array<i32>} : memref<2x10xf32, #tpu.memory_space<vmem>>, vector<2x10xf32>,
    } else {
    }
    %c0 = arith.constant 0 : index
    %c0_1 = arith.constant 0 : index
    %3 = vector.load %arg5[%c0, %c0_1] : memref<2x10xf32, #tpu.memory_space<vmem>>, vector<2x10xf32>
    %c0_2 = arith.constant 0 : index
    %c0_3 = arith.constant 0 : index
    %4 = vector.load %arg1[%c0_2, %c0_3] : memref<2x512xbf16, #tpu.memory_space<vmem>>, vector<2x512xbf16>
    %c0_4 = arith.constant 0 : index
    %c0_5 = arith.constant 0 : index
    %5 = vector.load %arg2[%c0_4, %c0_5] : memref<512x10xbf16, #tpu.memory_space<vmem>>, vector<512x10xbf16>
    %cst = arith.constant dense<0.000000e+00> : vector<2x10xf32>
    %6 = tpu.matmul %4, %5, %cst {dimension_numbers = #tpu.dot_dimension_numbers<[1], [0], [0], [1], [0, 0, 1, 1], [], []>} : vector<2x512xbf16>, vector<512x10xbf16>, vector<2x10xf32> -> vector<2x10xf32>
    %7 = arith.addf %3, %6 : vector<2x10xf32>
    %c0_6 = arith.constant 0 : index
    %c0_7 = arith.constant 0 : index
    %8 = vector.load %arg5[%c0_6, %c0_7] : memref<2x10xf32, #tpu.memory_space<vmem>>, vector<2x10xf32>
    tpu.vector_store %arg5[%c0_6, %c0_7], %7 {strides = array<i32>} : memref<2x10xf32, #tpu.memory_space<vmem>>, vector<2x10xf32>,
    %c0_8 = arith.constant 0 : index
    %c0_9 = arith.constant 0 : index
    %9 = vector.load %arg5[%c0_8, %c0_9] : memref<2x10xf32, #tpu.memory_space<vmem>>, vector<2x10xf32>
    %c0_10 = arith.constant 0 : index
    %c0_11 = arith.constant 0 : index
    %10 = vector.load %arg3[%c0_10, %c0_11] : memref<1x10xf32, #tpu.memory_space<vmem>>, vector<1x10xf32>
    %11 = vector.broadcast %10 : vector<1x10xf32> to vector<2x10xf32>
    %12 = arith.addf %9, %11 : vector<2x10xf32>
    %c0_12 = arith.constant 0 : index
    %c0_13 = arith.constant 0 : index
    %13 = vector.load %arg4[%c0_12, %c0_13] : memref<2x10xf32, #tpu.memory_space<vmem>>, vector<2x10xf32>
    tpu.vector_store %arg4[%c0_12, %c0_13], %12 {strides = array<i32>} : memref<2x10xf32, #tpu.memory_space<vmem>>, vector<2x10xf32>,
    return
  }
  func.func @transform_0(%arg0: i32) -> (i32, i32) {
    %c0_i32 = arith.constant 0 : i32
    %c0_i32_0 = arith.constant 0 : i32
    return %c0_i32, %arg0 : i32, i32
  }
  func.func @transform_1(%arg0: i32) -> (i32, i32) {
    %c0_i32 = arith.constant 0 : i32
    %c0_i32_0 = arith.constant 0 : i32
    return %arg0, %c0_i32 : i32, i32
  }
  func.func @transform_2(%arg0: i32) -> (i32, i32) {
    %c0_i32 = arith.constant 0 : i32
    %c0_i32_0 = arith.constant 0 : i32
    %c0_i32_1 = arith.constant 0 : i32
    return %c0_i32, %c0_i32_0 : i32, i32
  }
  func.func @transform_3(%arg0: i32) -> (i32, i32) {
    %c0_i32 = arith.constant 0 : i32
    %c0_i32_0 = arith.constant 0 : i32
    %c0_i32_1 = arith.constant 0 : i32
    return %c0_i32, %c0_i32_0 : i32, i32
  }
}

</mosaic_0001>

<bundles_post_ra>
// kernel: cnn_forward.3
= control target key start
LH: loop header
LB: loop body
LE: loop exit
PB: predicated region body
PF: predicated region fallthrough
CT: control target
= control target key end

     0   :  { %v100_v30 = vlaneseq  ;;  %v553_v34 = vmov 1966171168   ;;  %s693_s0 = inlined_call_operand.vmem [shape: bf16[2,512], index: 0, kind: input, shape index: {}]   ;;  %s694_s1 = inlined_call_operand.vmem [shape: bf16[512,10], index: 1, kind: input, shape index: {}]   ;;  %s695_s2 = inlined_call_operand.vmem [shape: f32[1,10], index: 2, kind: input, shape index: {}]   ;;  %s696_s3 = inlined_call_operand.hbm [shape: f32[2,10], index: 3, kind: output, shape index: {}]  }
   0x1   :  { %v497_v0 = vld [vmem:[%s694_s1 + $0x40] sm:$0xff]   ;;  %v501_v4 = vld [vmem:[%s694_s1 + $0x48] sm:$0xff]   ;;  %v505_v8 = vld [vmem:[%s694_s1 + $0x50] sm:$0xff]   ;;  %v98_v35 = vunpack.c.l.s4 %v553_v34 }
   0x2   :  { %v498_v1 = vld [vmem:[%s694_s1 + $0xc0] sm:$0xff]   ;;  %450 = vmatprep.subr.bf16.mxu0 %v497_v0  ;;  %v502_v5 = vld [vmem:[%s694_s1 + $0xc8] sm:$0xff]   ;;  %v506_v9 = vld [vmem:[%s694_s1 + $0xd0] sm:$0xff]   ;;  %v101_v36 = vshrl.u32 %v100_v30, 7 }
   0x3   :  { %v499_v2 = vld [vmem:[%s694_s1] sm:$0xff]   ;;  %472 = vmatprep.subr.bf16.mxu1 %v498_v1  ;;  %v503_v6 = vld [vmem:[%s694_s1 + $0x8] sm:$0xff]   ;;  %v507_v10 = vld [vmem:[%s694_s1 + $0x10] sm:$0xff]  }
   0x4   :  { %v500_v3 = vld [vmem:[%s694_s1 + $0x80] sm:$0xff]   ;;  %451 = vmatpush3.bf16.msra.mxu0 %v499_v2  ;;  %v504_v7 = vld [vmem:[%s694_s1 + $0x88] sm:$0xff]   ;;  %v508_v11 = vld [vmem:[%s694_s1 + $0x90] sm:$0xff]  }
   0x5   :  { %473 = vmatpush3.bf16.msra.mxu1 %v500_v3  ;;  %452 = vmatprep.subr.bf16.mxu0 %v501_v4  ;;  %v509_v12 = vld [vmem:[%s694_s1 + $0x58] sm:$0xff]   ;;  %v513_v16 = vld [vmem:[%s694_s1 + $0x60] sm:$0xff]   ;;  %v517_v20 = vld [vmem:[%s694_s1 + $0x68] sm:$0xff]  }
   0x6   :  { %474 = vmatprep.subr.bf16.mxu1 %v502_v5  ;;  %v510_v13 = vld [vmem:[%s694_s1 + $0xd8] sm:$0xff]   ;;  %v514_v17 = vld [vmem:[%s694_s1 + $0xe0] sm:$0xff]   ;;  %v518_v21 = vld [vmem:[%s694_s1 + $0xe8] sm:$0xff]  }
   0x7   :  { %v511_v14 = vld [vmem:[%s694_s1 + $0x18] sm:$0xff]   ;;  %v515_v18 = vld [vmem:[%s694_s1 + $0x20] sm:$0xff]   ;;  %v519_v22 = vld [vmem:[%s694_s1 + $0x28] sm:$0xff]  }
   0x8   :  { %453 = vmatpush3.bf16.msra.mxu0 %v503_v6  ;;  %v512_v15 = vld [vmem:[%s694_s1 + $0x98] sm:$0xff]   ;;  %v516_v19 = vld [vmem:[%s694_s1 + $0xa0] sm:$0xff]   ;;  %v520_v23 = vld [vmem:[%s694_s1 + $0xa8] sm:$0xff]  }
   0x9   :  { %475 = vmatpush3.bf16.msra.mxu1 %v504_v7  ;;  %454 = vmatprep.subr.bf16.mxu0 %v505_v8  ;;  %v521_v24 = vld [vmem:[%s694_s1 + $0x70] sm:$0xff]   ;;  %v525_v28 = vld [vmem:[%s694_s1 + $0x78] sm:$0xff]   ;;  %v416_v33 = vld.sshfl [vmem:[%s693_s0] sm:$0x33 pattern:$0x75316420] }
   0xa   :  { %476 = vmatprep.subr.bf16.mxu1 %v506_v9  ;;  %v522_v25 = vld [vmem:[%s694_s1 + $0xf0] sm:$0xff]   ;;  %v526_v29 = vld [vmem:[%s694_s1 + $0xf8] sm:$0xff]  }
   0xb   :  { %v523_v26 = vld [vmem:[%s694_s1 + $0x30] sm:$0xff]   ;;  %v527_v31 = vld [vmem:[%s694_s1 + $0x38] sm:$0xff]  }
   0xc   :  { %455 = vmatpush3.bf16.msra.mxu0 %v507_v10  ;;  %v524_v27 = vld [vmem:[%s694_s1 + $0xb0] sm:$0xff]   ;;  %v528_v32 = vld [vmem:[%s694_s1 + $0xb8] sm:$0xff]  }
   0xd   :  { %477 = vmatpush3.bf16.msra.mxu1 %v508_v11  ;;  %456 = vmatprep.subr.bf16.mxu0 %v509_v12 }
   0xe   :  { %478 = vmatprep.subr.bf16.mxu1 %v510_v13 }
  0x10   :  { %457 = vmatpush3.bf16.msra.mxu0 %v511_v14 }
  0x11   :  { %479 = vmatpush3.bf16.msra.mxu1 %v512_v15  ;;  %458 = vmatprep.subr.bf16.mxu0 %v513_v16 }
  0x12   :  { %480 = vmatprep.subr.bf16.mxu1 %v514_v17 }
  0x14   :  { %459 = vmatpush3.bf16.msra.mxu0 %v515_v18 }
  0x15   :  { %481 = vmatpush3.bf16.msra.mxu1 %v516_v19  ;;  %460 = vmatprep.subr.bf16.mxu0 %v517_v20 }
  0x16   :  { %482 = vmatprep.subr.bf16.mxu1 %v518_v21 }
  0x18   :  { %461 = vmatpush3.bf16.msra.mxu0 %v519_v22 }
  0x19   :  { %483 = vmatpush3.bf16.msra.mxu1 %v520_v23  ;;  %462 = vmatprep.subr.bf16.mxu0 %v521_v24 }
  0x1a   :  { %484 = vmatprep.subr.bf16.mxu1 %v522_v25 }
  0x1c   :  { %463 = vmatpush3.bf16.msra.mxu0 %v523_v26 }
  0x1d   :  { %485 = vmatpush3.bf16.msra.mxu1 %v524_v27  ;;  %464 = vmatprep.subr.bf16.mxu0 %v525_v28 }
  0x1e   :  { %486 = vmatprep.subr.bf16.mxu1 %v526_v29 }
  0x20   :  { %465 = vmatpush3.bf16.msra.mxu0 %v527_v31 }
  0x21   :  { %487 = vmatpush3.bf16.msra.mxu1 %v528_v32 }
  0x22   :  { %8 = vsyncpa [#allocation4], 0  ;;  %v96_v37 = vcombine.high %v416_v33, %v416_v33  ;;  %v99_v38 = vunpack.c.0.s8 %v98_v35  ;;  %vm20_vm0 = vcmask 74752   ;;  %v554_v44 = vmov 0.0   ;;  %v449_v58 = vld [vmem:[%s695_s2] ss:$0 sm:$0xff] }
  0x23   :  { %21 = vst.msk [vmem:[#allocation2] sm:$0x3] %vm20_vm0, %v554_v44  ;;  %s555_s24 = smov [#allocation3]  }
  0x24   :  { %v102_v39 = vsub.s32 %v99_v38, %v101_v36  ;;  %s408_s25 = sshll.u32 %s555_s24, 4  ;;  %s409_s25 = int_to_ptr.vmem [resolvable:$true] %s408_s25 }
  0x25   :  { %s529_s26 = scalar_lea.vmem %s409_s25, 32  ;;  %p534_p1 = scmp.lt.s32.totalorder %s409_s25, %s409_s25 }
  0x26   :  { %v110_v40 = vrot.slane %v96_v37, %v102_v39  ;;  %v103_v41 = vrot.slane %v416_v33, %v102_v39  ;;  %p530_p0 = scmp.ne.s32.totalorder %s409_s25, %s529_s26  ;;  %p535_p2 = scmp.lt.s32.totalorder %s529_s26, %s529_s26 }
  0x28   :  { %341 = vmatprep.mubr.bf16.mxu0 %v110_v40  ;;  %v112_v42 = vcombine.high %v110_v40, %v110_v40  ;;  %v111_v43 = vcombine.high %v103_v41, %v103_v41  ;;  %p536_p3 = por %p535_p2, %p534_p1 }
  0x29   :  { %342 = vmatmul.mubr.bf16.vlgmr.msra.gmra.mrb[0].mxu0 %v103_v41 }
  0x2a   :  { %381 = vmatprep.mubr.bf16.mxu1 %v112_v42  ;;  %v22_v55 = vld [vmem:[#allocation2] sm:$0x3]  ;;  %p537_p4 = pnand %p536_p3, %p530_p0 }
  0x2b   :  { %382 = vmatmul.mubr.bf16.vlgmr.msra.gmra.mrb[0].mxu1 %v111_v43 }
  0xfc   :  { %v466_v45 = vpop.f32.mrb[0].mxu0 }
  0xfd   :  { %v467_v46 = vpop.f32.mrb[1].mxu0 }
  0xfe   :  { %v488_v47 = vpop.f32.mrb[0].mxu1  ;;  %v468_v48 = vadd.f32 %v467_v46, %v466_v45  ;;  %v469_v49 = vpop.f32.mrb[2].mxu0 }
  0xff   :  { %v489_v50 = vpop.f32.mrb[1].mxu1  ;;  %v470_v51 = vpop.f32.mrb[3].mxu0 }
 0x100   :  { %v490_v52 = vadd.f32 %v489_v50, %v488_v47  ;;  %v491_v53 = vpop.f32.mrb[2].mxu1 }
 0x101   :  { %v492_v54 = vpop.f32.mrb[3].mxu1 }
 0x102   :  { %v384_v56 = vadd.f32 %v490_v52, %v468_v48 }
 0x104   :  { %v389_v57 = vadd.f32 %v384_v56, %v22_v55 }
 0x106   :  { %391 = vst.msk [vmem:[#allocation2] sm:$0x3] %vm20_vm0, %v389_v57 }
 0x10d   :  { %v392_v59 = vld [vmem:[#allocation2] sm:$0x3] }
 0x10e   :  { %v400_v60 = vadd.f32 %v449_v58, %v392_v59 }
 0x110   :  { %401 = vst.msk [vmem:[#allocation3] sm:$0x3] %vm20_vm0, %v400_v60 }
 0x111   :  { %540 = shalt.err (!%p537_p4)
}
 0x112   :  { %s541_s29 = scalar_lea.hbm %s696_s3, 32 }
 0x113   :  { %p542_p5 = scmp.ne.s32.totalorder %s696_s3, %s541_s29  ;;  %p545_p6 = scmp.lt.u32.totalorder %s541_s29, %s696_s3 }
 0x115   :  { %p547_p7 = pnand %p545_p6, %p542_p5 }
 0x117   :  { %550 = shalt.err (!%p547_p7)
}
 0x118   :  { %411 = dma.vmem_to_hbm [thread:$0]  %s409_s25, 32, %s696_s3, [#allocation4]  }
 0x119   :  { %551 = dma.done.wait [#allocation4], 32  }
 0x11a   :  { %552 = vsyncadd [#allocation4], 4294967264 }
 0x11b   :  { %415 = vsyncpa [#allocation4], 1 }

// kernel: cnn_forward.2
= control target key start
LH: loop header
LB: loop body
LE: loop exit
PB: predicated region body
PF: predicated region fallthrough
CT: control target
= control target key end

     0   :  { %s1960_s15 = smov 0   ;;  %s2583_s0 = inlined_call_operand.vmem [shape: bf16[2,18,9,4], index: 0, kind: input, shape index: {}]   ;;  %s2584_s1 = inlined_call_operand.vmem [shape: bf16[2,18,9,4], index: 1, kind: input, shape index: {}]   ;;  %s2585_s2 = inlined_call_operand.vmem [shape: bf16[36,128], index: 2, kind: input, shape index: {}]   ;;  %s2586_s3 = inlined_call_operand.vmem [shape: f32[1,128], index: 3, kind: input, shape index: {}]   ;;  %s2587_s4 = inlined_call_operand.vmem [shape: bf16[2,8,8,8], index: 4, kind: output, shape index: {}]  }
   0x1 LB: > { %s1668_s16 = sadd.s32 4294967295, %s1929_s15   ;;  %p1672_p0 = scmp.ge.s32.totalorder %s1929_s15, 1  ;;  %s1929_s15 = sphi %s1960_s15, %s14_s15  }
   0x2   : > { %p172_p1 = scmp.lt.s32.totalorder %s1929_s15, 3 }
   0x4   : > { %p173_p2 = pnand %p1672_p0, %p172_p1 }
   0x5   : > { %p203_p3 = scmp.lt.s32.totalorder (!%p173_p2), %s1668_s16, 1  ;;  %s1931_s24 = smov (!%p173_p2), 4   ;;  %vm633_vm0 = vcmask (!%p173_p2), 31744   ;;  %vm688_vm1 = vcmask (!%p173_p2), 64512   ;;  %vm1372_vm2 = vcmask (!%p173_p2), 1041408   ;;  %vm810_vm3 = vcmask (!%p173_p2), 97280  }
   0x6   : > { %176 = sbr.rel (%p173_p2) target bundleno = 615 (0x267), region = 36  ;;  %s1932_s25 = smov (!%p173_p2), 8   ;;  %vm835_vm4 = vcmask (!%p173_p2), 195584   ;;  %vm1339_vm5 = vcmask (!%p173_p2), 293888   ;;  %vm1592_vm6 = vcmask (!%p173_p2), 60416  }
   0x7   : > { %s1933_s6 = smov (!%p173_p2), 12   ;;  %s1934_s7 = smov (!%p173_p2), 24  }
   0xd   : > { %s2589_s16 = smov (!%p203_p3, %s1668_s16), 1 }
   0xe   : > { %s1853_s17 = smul.u32 144, %s2589_s16  ;;  %s1787_s10 = sshll.u32 %s2589_s16, 5 }
   0xf   : > { %s2556_s13 = scalar_lea.vmem %s2587_s4, %s1787_s10 }
  0x10   : > { %s1974_s20 = scalar_lea.vmem %s2584_s1, %s1853_s17  ;;  %s1979_s23 = scalar_lea.vmem %s2583_s0, %s1853_s17 }
  0x11   : > { %v1982_v0 = vld [vmem:[%s1974_s20 + $0x8] sm:$0xf]  ;;  %v1985_v1 = vld [vmem:[%s1974_s20 + $0x20] sm:$0xf]  ;;  %v258_v2 = vld [vmem:[%s1974_s20 + $0xc] sm:$0x1] }
  0x12   : > { %v1678_v3 = vcombine.low %v1982_v0, %v1982_v0  ;;  %v1681_v4 = vcombine.low %v1985_v1, %v1985_v1  ;;  %v1993_v5 = vld [vmem:[%s1974_s20 + $0x10] sm:$0xf]  ;;  %v1996_v6 = vld [vmem:[%s1979_s23 + $0x8] sm:$0xf]  ;;  %v222_v7 = vld [vmem:[%s1979_s23 + $0xc] sm:$0x1]  ;;  %v1731_v21 = vcombine.low %v1982_v0, %v258_v2 }
  0x13   : > { %v2000_v8 = vld [vmem:[%s1974_s20 + $0x18] sm:$0xf]  ;;  %v2003_v9 = vld [vmem:[%s1979_s23 + $0x10] sm:$0xf]  ;;  %v1679_v10 = vcombine.low %v1993_v5, %v1993_v5  ;;  %v1696_v11 = vcombine.low %v1996_v6, %v222_v7  ;;  %v224_v12 = vld [vmem:[%s1979_s23 + $0x14] sm:$0x1] }
  0x14   : > { %347 = vrot.lane.b32.xlu0 %v1678_v3, %s1931_s24  ;;  %353 = vrot.lane.b32.xlu1 %v1681_v4, %s1931_s24  ;;  %v2012_v13 = vld [vmem:[%s1979_s23 + $0x18] sm:$0xf]  ;;  %v1697_v14 = vcombine.low %v2003_v9, %v224_v12  ;;  %v226_v15 = vld [vmem:[%s1979_s23 + $0x1c] sm:$0x1]  ;;  %v1680_v22 = vcombine.low %v2000_v8, %v2000_v8  ;;  %v952_v31 = vshll.u32 %v1731_v21, 16  ;;  %v950_v37 = vshrl.u32 %v1731_v21, 16 }
  0x15   : > { %v2017_v16 = vld [vmem:[%s1979_s23 + $0x20] sm:$0xf]  ;;  %v228_v17 = vld [vmem:[%s1979_s23 + $0x24] sm:$0x1]  ;;  %v479_v18 = vshrl.u32 %v1696_v11, 16  ;;  %v481_v19 = vshll.u32 %v1696_v11, 16  ;;  %v1698_v20 = vcombine.low %v2012_v13, %v226_v15 }
  0x16   : > { %v488_v23 = vshll.u32 %v1697_v14, 16  ;;  %v486_v25 = vshrl.u32 %v1697_v14, 16  ;;  %v1699_v27 = vcombine.low %v2017_v16, %v228_v17  ;;  %v260_v28 = vld [vmem:[%s1974_s20 + $0x14] sm:$0x1]  ;;  %v954_v38 = vrot.slane %v952_v31, 1 }
  0x17   : > { %v483_v24 = vrot.slane %v481_v19, 1  ;;  %v495_v26 = vshll.u32 %v1698_v20, 16  ;;  %v1732_v32 = vcombine.low %v1993_v5, %v260_v28  ;;  %v493_v34 = vshrl.u32 %v1698_v20, 16  ;;  %v2033_v43 = vld [vmem:[%s1979_s23 + $0x28] sm:$0xf] }
  0x18   : > { %349 = vrot.lane.b32.xlu0 %v1679_v10, %s1931_s24  ;;  %v490_v29 = vrot.slane %v488_v23, 1  ;;  %v502_v36 = vshll.u32 %v1699_v27, 16  ;;  %v500_v40 = vshrl.u32 %v1699_v27, 16  ;;  %v230_v44 = vld [vmem:[%s1979_s23 + $0x2c] sm:$0x1]  ;;  %v955_v46 = vor.u32 %v954_v38, %v950_v37 }
  0x19   : > { %v484_v30 = vor.u32 %v483_v24, %v479_v18  ;;  %v497_v35 = vrot.slane %v495_v26, 1  ;;  %v959_v42 = vshll.u32 %v1732_v32, 16  ;;  %v262_v45 = vld [vmem:[%s1974_s20 + $0x1c] sm:$0x1]  ;;  %v957_v47 = vshrl.u32 %v1732_v32, 16 }
  0x1a   : > { %v491_v33 = vor.u32 %v490_v29, %v486_v25  ;;  %v504_v41 = vrot.slane %v502_v36, 1  ;;  %v264_v48 = vld [vmem:[%s1974_s20 + $0x24] sm:$0x1]  ;;  %v1700_v51 = vcombine.low %v2033_v43, %v230_v44  ;;  %v1733_v52 = vcombine.low %v2000_v8, %v262_v45  ;;  %v2043_v53 = vld [vmem:[%s1974_s20 + $0x28] sm:$0xf] }
  0x1b   : > { %854 = vrot.lane.b32.xlu1 %v484_v30, %s1931_s24  ;;  %v498_v39 = vor.u32 %v497_v35, %v493_v34  ;;  %v961_v50 = vrot.slane %v959_v42, 1  ;;  %v1734_v54 = vcombine.low %v1985_v1, %v264_v48  ;;  %v1682_v56 = vcombine.low %v2043_v53, %v2043_v53  ;;  %v266_v59 = vld [vmem:[%s1974_s20 + $0x2c] sm:$0x1]  ;;  %v2055_v4 = vld [vmem:[%s1979_s23 + $0x30] sm:$0xf] }
  0x1c   : > { %351 = vrot.lane.b32.xlu0 %v1680_v22, %s1931_s24  ;;  %v505_v49 = vor.u32 %v504_v41, %v500_v40  ;;  %v509_v57 = vshll.u32 %v1700_v51, 16  ;;  %v966_v58 = vshll.u32 %v1733_v52, 16  ;;  %v507_v60 = vshrl.u32 %v1700_v51, 16  ;;  %v232_v7 = vld [vmem:[%s1979_s23 + $0x34] sm:$0x1] }
  0x1d   : > { %v962_v55 = vor.u32 %v961_v50, %v957_v47  ;;  %v973_v61 = vshll.u32 %v1734_v54, 16  ;;  %v964_v63 = vshrl.u32 %v1733_v52, 16  ;;  %v1735_v3 = vcombine.low %v2043_v53, %v266_v59  ;;  %v2062_v18 = vld [vmem:[%s1974_s20 + $0x30] sm:$0xf]  ;;  %v2067_v23 = vld [vmem:[%s1979_s23 + $0x38] sm:$0xf] }
  0x1e   : > { %v511_v62 = vrot.slane %v509_v57, 1  ;;  %v968_v2 = vrot.slane %v966_v58, 1  ;;  %v971_v10 = vshrl.u32 %v1734_v54, 16  ;;  %v1701_v17 = vcombine.low %v2055_v4, %v232_v7  ;;  %v234_v24 = vld [vmem:[%s1979_s23 + $0x3c] sm:$0x1] }
  0x1f   : > { %856 = vrot.lane.b32.xlu1 %v491_v33, %s1931_s24  ;;  %v975_v11 = vrot.slane %v973_v61, 1  ;;  %v980_v15 = vshll.u32 %v1735_v3, 16  ;;  %v978_v20 = vshrl.u32 %v1735_v3, 16  ;;  %v2071_v25 = vld [vmem:[%s1979_s23 + $0x40] sm:$0xf]  ;;  %v1683_v27 = vcombine.low %v2062_v18, %v2062_v18 }
  0x20   : > { %599 = vrot.lane.b32.xlu0 %v484_v30, %s1932_s25  ;;  %v512_v12 = vor.u32 %v511_v62, %v507_v60  ;;  %v969_v14 = vor.u32 %v968_v2, %v964_v63  ;;  %v516_v22 = vshll.u32 %v1701_v17, 16  ;;  %v236_v26 = vld [vmem:[%s1979_s23 + $0x44] sm:$0x1]  ;;  %v514_v28 = vshrl.u32 %v1701_v17, 16  ;;  %v2079_v31 = vld [vmem:[%s1974_s20 + $0x38] sm:$0xf] }
  0x21   : > { %v976_v19 = vor.u32 %v975_v11, %v971_v10  ;;  %v982_v21 = vrot.slane %v980_v15, 1  ;;  %v1702_v32 = vcombine.low %v2067_v23, %v234_v24  ;;  %v268_v34 = vld [vmem:[%s1974_s20 + $0x34] sm:$0x1]  ;;  %v1684_v35 = vcombine.low %v2079_v31, %v2079_v31  ;;  %v2089_v37 = vld [vmem:[%s1974_s20 + $0x40] sm:$0xf] }
  0x22   : > { %v518_v30 = vrot.slane %v516_v22, 1  ;;  %v1736_v40 = vcombine.low %v2062_v18, %v268_v34  ;;  %v1685_v41 = vcombine.low %v2089_v37, %v2089_v37  ;;  %v2095_v44 = vld [vmem:[%s1979_s23 + $0x48] sm:$0xf]  ;;  %v270_v50 = vld [vmem:[%s1974_s20 + $0x3c] sm:$0x1] }
  0x23   : > { %601 = vrot.lane.b32.xlu1 %v491_v33, %s1932_s25  ;;  %v983_v29 = vor.u32 %v982_v21, %v978_v20  ;;  %v1703_v33 = vcombine.low %v2071_v25, %v236_v26  ;;  %v523_v38 = vshll.u32 %v1702_v32, 16  ;;  %v521_v42 = vshrl.u32 %v1702_v32, 16  ;;  %v2106_v58 = vld [vmem:[%s1974_s20 + $0x48] sm:$0xf]  ;;  %v272_v59 = vld [vmem:[%s1974_s20 + $0x44] sm:$0x1] }
  0x24   : > { %858 = vrot.lane.b32.xlu0 %v498_v39, %s1931_s24  ;;  %v519_v36 = vor.u32 %v518_v30, %v514_v28  ;;  %v987_v48 = vshll.u32 %v1736_v40, 16  ;;  %v985_v51 = vshrl.u32 %v1736_v40, 16  ;;  %v1737_v57 = vcombine.low %v2079_v31, %v270_v50  ;;  %v274_v3 = vld [vmem:[%s1974_s20 + $0x4c] sm:$0x1]  ;;  %v2119_v17 = vld [vmem:[%s1979_s23 + $0x50] sm:$0xf] }
  0x25   : > { %v525_v45 = vrot.slane %v523_v38, 1  ;;  %v1686_v62 = vcombine.low %v2106_v58, %v2106_v58  ;;  %v1738_v2 = vcombine.low %v2089_v37, %v272_v59  ;;  %v1739_v15 = vcombine.low %v2106_v58, %v274_v3  ;;  %v2126_v28 = vld [vmem:[%s1974_s20 + $0x50] sm:$0xf]  ;;  %v244_v38 = vld [vmem:[%s1979_s23 + $0x64] sm:$0x1] }
  0x26   : > { %v994_v63 = vshll.u32 %v1737_v57, 16  ;;  %v992_v11 = vshrl.u32 %v1737_v57, 16  ;;  %v2159_v59 = vld [vmem:[%s1979_s23 + $0x68] sm:$0xf]  ;;  %v278_v3 = vld [vmem:[%s1974_s20 + $0x5c] sm:$0x1] }
  0x27   : > { %860 = vrot.lane.b32.xlu1 %v505_v49, %s1931_s24  ;;  %v526_v54 = vor.u32 %v525_v45, %v521_v42  ;;  %v999_v21 = vshrl.u32 %v1738_v2, 16  ;;  %v1008_v26 = vshll.u32 %v1739_v15, 16  ;;  %v1006_v32 = vshrl.u32 %v1739_v15, 16  ;;  %v2169_v15 = vld [vmem:[%s1974_s20 + $0x68] sm:$0xf] }
  0x28   : > { %1070 = vrot.lane.b32.xlu0 %v955_v46, %s1932_s25  ;;  %v528_v46 = vshrl.u32 %v1703_v33, 16 }
  0x2b   : > { %1072 = vrot.lane.b32.xlu1 %v962_v55, %s1932_s25 }
  0x2c   : > { %355 = vrot.lane.b32.xlu0 %v1682_v56, %s1931_s24  ;;  %v989_v56 = vrot.slane %v987_v48, 1  ;;  %v276_v48 = vld [vmem:[%s1974_s20 + $0x54] sm:$0x1] }
  0x2e   : > { %v990_v61 = vor.u32 %v989_v56, %v985_v51  ;;  %v2153_v51 = vld [vmem:[%s1974_s20 + $0x60] sm:$0xf] }
  0x2f   : > { %603 = vrot.lane.b32.xlu1 %v498_v39, %s1932_s25  ;;  %v530_v39 = vshll.u32 %v1703_v33, 16  ;;  %v1010_v33 = vrot.slane %v1008_v26, 1  ;;  %v1689_v56 = vcombine.low %v2153_v51, %v2153_v51 }
  0x30   : > { %605 = vrot.lane.b32.xlu0 %v505_v49, %s1932_s25  ;;  %v238_v49 = vld [vmem:[%s1979_s23 + $0x4c] sm:$0x1] }
  0x31   : > { %v532_v47 = vrot.slane %v530_v39, 1  ;;  %v1704_v52 = vcombine.low %v2095_v44, %v238_v49  ;;  %v1687_v39 = vcombine.low %v2126_v28, %v2126_v28 }
  0x33   : > { %862 = vrot.lane.b32.xlu1 %v512_v12, %s1931_s24  ;;  %v533_v55 = vor.u32 %v532_v47, %v528_v46  ;;  %v537_v60 = vshll.u32 %v1704_v52, 16  ;;  %v535_v7 = vshrl.u32 %v1704_v52, 16  ;;  %v2144_v46 = vld [vmem:[%s1974_s20 + $0x58] sm:$0xf] }
  0x34   : > { %1074 = vrot.lane.b32.xlu0 %v969_v14, %s1932_s25  ;;  %v1001_v14 = vshll.u32 %v1738_v2, 16  ;;  %v1688_v49 = vcombine.low %v2144_v46, %v2144_v46  ;;  %v246_v2 = vld [vmem:[%s1979_s23 + $0x6c] sm:$0x1] }
  0x35   : > { %v539_v10 = vrot.slane %v537_v60, 1 }
  0x36   : > { %v1003_v24 = vrot.slane %v1001_v14, 1 }
  0x37   : > { %1076 = vrot.lane.b32.xlu1 %v976_v19, %s1932_s25  ;;  %v240_v19 = vld [vmem:[%s1979_s23 + $0x54] sm:$0x1]  ;;  %v540_v20 = vor.u32 %v539_v10, %v535_v7  ;;  %v1708_v10 = vcombine.low %v2159_v59, %v246_v2 }
  0x38   : > { %607 = vrot.lane.b32.xlu0 %v512_v12, %s1932_s25  ;;  %v996_v12 = vrot.slane %v994_v63, 1  ;;  %v1004_v30 = vor.u32 %v1003_v24, %v999_v21  ;;  %v1690_v21 = vcombine.low %v2169_v15, %v2169_v15 }
  0x39   : > { %v565_v24 = vshll.u32 %v1708_v10, 16 }
  0x3a   : > { %v997_v22 = vor.u32 %v996_v12, %v992_v11 }
  0x3b   : > { %1078 = vrot.lane.b32.xlu1 %v983_v29, %s1932_s25  ;;  %v2129_v29 = vld [vmem:[%s1979_s23 + $0x58] sm:$0xf] }
  0x3c   : > { %357 = vrot.lane.b32.xlu0 %v1683_v27, %s1931_s24  ;;  %v1705_v27 = vcombine.low %v2119_v17, %v240_v19  ;;  %v1741_v19 = vcombine.low %v2144_v46, %v278_v3 }
  0x3e   : > { %v544_v34 = vshll.u32 %v1705_v27, 16  ;;  %v542_v42 = vshrl.u32 %v1705_v27, 16  ;;  %v1022_v26 = vshll.u32 %v1741_v19, 16 }
  0x3f   : > { %864 = vrot.lane.b32.xlu1 %v519_v36, %s1931_s24 }
  0x40   : > { %359 = vrot.lane.b32.xlu0 %v1684_v35, %s1931_s24  ;;  %v242_v35 = vld [vmem:[%s1979_s23 + $0x5c] sm:$0x1]  ;;  %v546_v45 = vrot.slane %v544_v34, 1  ;;  %v2180_v34 = vld [vmem:[%s1979_s23 + $0x70] sm:$0xf] }
  0x41   : > { %v1706_v40 = vcombine.low %v2129_v29, %v242_v35  ;;  %v567_v35 = vrot.slane %v565_v24, 1 }
  0x42   : > { %v547_v50 = vor.u32 %v546_v45, %v542_v42 }
  0x43   : > { %361 = vrot.lane.b32.xlu1 %v1685_v41, %s1931_s24  ;;  %v1011_v41 = vor.u32 %v1010_v33, %v1006_v32  ;;  %v551_v52 = vshll.u32 %v1706_v40, 16  ;;  %v549_v57 = vshrl.u32 %v1706_v40, 16  ;;  %v563_v32 = vshrl.u32 %v1708_v10, 16 }
  0x44   : > { %609 = vrot.lane.b32.xlu0 %v519_v36, %s1932_s25  ;;  %v2135_v36 = vld [vmem:[%s1979_s23 + $0x60] sm:$0xf]  ;;  %v1020_v33 = vshrl.u32 %v1741_v19, 16  ;;  %v284_v19 = vld [vmem:[%s1974_s20 + $0x74] sm:$0x1] }
  0x45   : > { %v1707_v47 = vcombine.low %v2135_v36, %v244_v38  ;;  %v553_v60 = vrot.slane %v551_v52, 1  ;;  %v1024_v38 = vrot.slane %v1022_v26, 1  ;;  %v2190_v52 = vld [vmem:[%s1974_s20 + $0x70] sm:$0xf] }
  0x46   : > { %v1691_v2 = vcombine.low %v2190_v52, %v2190_v52 }
  0x47   : > { %866 = vrot.lane.b32.xlu1 %v526_v54, %s1931_s24  ;;  %v554_v11 = vor.u32 %v553_v60, %v549_v57  ;;  %v2195_v60 = vld [vmem:[%s1979_s23 + $0x78] sm:$0xf] }
  0x48   : > { %868 = vrot.lane.b32.xlu0 %v533_v55, %s1931_s24 }
  0x4b   : > { %1080 = vrot.lane.b32.xlu1 %v990_v61, %s1932_s25  ;;  %v556_v61 = vshrl.u32 %v1707_v47, 16 }
  0x4c   : > { %363 = vrot.lane.b32.xlu0 %v1686_v62, %s1931_s24 }
  0x4f   : > { %611 = vrot.lane.b32.xlu1 %v526_v54, %s1932_s25  ;;  %v558_v54 = vshll.u32 %v1707_v47, 16  ;;  %v568_v47 = vor.u32 %v567_v35, %v563_v32 }
  0x50   : > { %613 = vrot.lane.b32.xlu0 %v533_v55, %s1932_s25  ;;  %v1740_v55 = vcombine.low %v2126_v28, %v276_v48  ;;  %v1025_v48 = vor.u32 %v1024_v38, %v1020_v33  ;;  %v2223_v33 = vld [vmem:[%s1979_s23 + $0x88] sm:$0xf] }
  0x51   : > { %v560_v62 = vrot.slane %v558_v54, 1 }
  0x52   : > { %v1015_v63 = vshll.u32 %v1740_v55, 16  ;;  %v1013_v7 = vshrl.u32 %v1740_v55, 16 }
  0x53   : > { %870 = vrot.lane.b32.xlu1 %v540_v20, %s1931_s24  ;;  %v561_v12 = vor.u32 %v560_v62, %v556_v61  ;;  %v250_v61 = vld [vmem:[%s1979_s23 + $0x7c] sm:$0x1]  ;;  %v2199_v62 = vld [vmem:[%s1979_s23 + $0x80] sm:$0xf] }
  0x54   : > { %1082 = vrot.lane.b32.xlu0 %v997_v22, %s1932_s25  ;;  %v1017_v14 = vrot.slane %v1015_v63, 1  ;;  %v252_v63 = vld [vmem:[%s1979_s23 + $0x84] sm:$0x1] }
  0x56   : > { %v1018_v22 = vor.u32 %v1017_v14, %v1013_v7  ;;  %v1711_v14 = vcombine.low %v2199_v62, %v252_v63 }
  0x57   : > { %1084 = vrot.lane.b32.xlu1 %v1004_v30, %s1932_s25  ;;  %v282_v30 = vld [vmem:[%s1974_s20 + $0x6c] sm:$0x1] }
  0x58   : > { %615 = vrot.lane.b32.xlu0 %v540_v20, %s1932_s25  ;;  %v280_v20 = vld [vmem:[%s1974_s20 + $0x64] sm:$0x1]  ;;  %v1743_v40 = vcombine.low %v2169_v15, %v282_v30  ;;  %v586_v26 = vshll.u32 %v1711_v14, 16  ;;  %v584_v38 = vshrl.u32 %v1711_v14, 16 }
  0x59   : > { %v1742_v27 = vcombine.low %v2153_v51, %v280_v20 }
  0x5a   : > { %v1034_v55 = vshrl.u32 %v1743_v40, 16 }
  0x5b   : > { %1086 = vrot.lane.b32.xlu1 %v1011_v41, %s1932_s25  ;;  %v248_v41 = vld [vmem:[%s1979_s23 + $0x74] sm:$0x1]  ;;  %v1027_v42 = vshrl.u32 %v1742_v27, 16 }
  0x5c   : > { %365 = vrot.lane.b32.xlu0 %v1687_v39, %s1931_s24  ;;  %v1029_v39 = vshll.u32 %v1742_v27, 16  ;;  %v1709_v45 = vcombine.low %v2180_v34, %v248_v41  ;;  %v1744_v27 = vcombine.low %v2190_v52, %v284_v19  ;;  %v254_v41 = vld [vmem:[%s1979_s23 + $0x8c] sm:$0x1] }
  0x5e   : > { %v572_v57 = vshll.u32 %v1709_v45, 16  ;;  %v570_v3 = vshrl.u32 %v1709_v45, 16  ;;  %v1041_v45 = vshrl.u32 %v1744_v27, 16 }
  0x5f   : > { %872 = vrot.lane.b32.xlu1 %v547_v50, %s1931_s24 }
  0x60   : > { %367 = vrot.lane.b32.xlu0 %v1688_v49, %s1931_s24  ;;  %v1031_v49 = vrot.slane %v1029_v39, 1  ;;  %v574_v10 = vrot.slane %v572_v57, 1  ;;  %v588_v39 = vrot.slane %v586_v26, 1 }
  0x62   : > { %v1032_v54 = vor.u32 %v1031_v49, %v1027_v42  ;;  %v286_v42 = vld [vmem:[%s1974_s20 + $0x7c] sm:$0x1]  ;;  %v589_v49 = vor.u32 %v588_v39, %v584_v38 }
  0x63   : > { %369 = vrot.lane.b32.xlu1 %v1689_v56, %s1931_s24 }
  0x64   : > { %617 = vrot.lane.b32.xlu0 %v547_v50, %s1932_s25  ;;  %v1036_v50 = vshll.u32 %v1743_v40, 16  ;;  %v1043_v40 = vshll.u32 %v1744_v27, 16 }
  0x66   : > { %v1038_v56 = vrot.slane %v1036_v50, 1  ;;  %v1045_v50 = vrot.slane %v1043_v40, 1 }
  0x67   : > { %874 = vrot.lane.b32.xlu1 %v554_v11, %s1931_s24 }
  0x68   : > { %876 = vrot.lane.b32.xlu0 %v561_v12, %s1931_s24  ;;  %v1039_v7 = vor.u32 %v1038_v56, %v1034_v55  ;;  %v288_v56 = vld [vmem:[%s1974_s20 + $0x84] sm:$0x1] }
  0x6b   : > { %1088 = vrot.lane.b32.xlu1 %v1018_v22, %s1932_s25  ;;  %v2217_v22 = vld [vmem:[%s1974_s20 + $0x80] sm:$0xf] }
  0x6c   : > { %371 = vrot.lane.b32.xlu0 %v1690_v21, %s1931_s24  ;;  %v575_v21 = vor.u32 %v574_v10, %v570_v3  ;;  %v1693_v30 = vcombine.low %v2217_v22, %v2217_v22  ;;  %v1746_v10 = vcombine.low %v2217_v22, %v288_v56 }
  0x6e   : > { %v1057_v27 = vshll.u32 %v1746_v10, 16  ;;  %v1055_v39 = vshrl.u32 %v1746_v10, 16 }
  0x6f   : > { %619 = vrot.lane.b32.xlu1 %v554_v11, %s1932_s25  ;;  %v2207_v11 = vld [vmem:[%s1974_s20 + $0x78] sm:$0xf] }
  0x70   : > { %621 = vrot.lane.b32.xlu0 %v561_v12, %s1932_s25  ;;  %v1710_v12 = vcombine.low %v2195_v60, %v250_v61  ;;  %v1692_v20 = vcombine.low %v2207_v11, %v2207_v11  ;;  %v1745_v55 = vcombine.low %v2207_v11, %v286_v42 }
  0x72   : > { %v579_v24 = vshll.u32 %v1710_v12, 16  ;;  %v577_v32 = vshrl.u32 %v1710_v12, 16  ;;  %v290_v12 = vld [vmem:[%s1974_s20 + $0x8c] sm:$0x1] }
  0x73   : > { %878 = vrot.lane.b32.xlu1 %v568_v47, %s1931_s24 }
  0x74   : > { %1090 = vrot.lane.b32.xlu0 %v1025_v48, %s1932_s25  ;;  %v581_v35 = vrot.slane %v579_v24, 1  ;;  %v1048_v24 = vshrl.u32 %v1745_v55, 16 }
  0x76   : > { %v582_v48 = vor.u32 %v581_v35, %v577_v32  ;;  %v220_v32 = vld [vmem:[%s1979_s23 + $0x4] sm:$0x1] }
  0x77   : > { %1092 = vrot.lane.b32.xlu1 %v1032_v54, %s1932_s25  ;;  %v2233_v54 = vld [vmem:[%s1974_s20 + $0x88] sm:$0xf] }
  0x78   : > { %623 = vrot.lane.b32.xlu0 %v568_v47, %s1932_s25  ;;  %v1712_v47 = vcombine.low %v2223_v33, %v254_v41  ;;  %v1694_v61 = vcombine.low %v2233_v54, %v2233_v54 }
  0x7a   : > { %v593_v3 = vshll.u32 %v1712_v47, 16  ;;  %v591_v19 = vshrl.u32 %v1712_v47, 16 }
  0x7b   : > { %1094 = vrot.lane.b32.xlu1 %v1039_v7, %s1932_s25  ;;  %v1050_v7 = vshll.u32 %v1745_v55, 16  ;;  %v256_v55 = vld [vmem:[%s1974_s20 + $0x4] sm:$0x1] }
  0x7c   : > { %373 = vrot.lane.b32.xlu0 %v1691_v2, %s1931_s24  ;;  %v1046_v2 = vor.u32 %v1045_v50, %v1041_v45  ;;  %v1059_v45 = vrot.slane %v1057_v27, 1  ;;  %v2262_v50 = vld [vmem:[%s1974_s20] sm:$0xf] }
  0x7d   : > { %v1052_v26 = vrot.slane %v1050_v7, 1  ;;  %v1920_v27 = vld [vmem:[%s2585_s2] sm:$0xff]  }
  0x7e   : > { %1807 = vmatprep.subr.bf16.mxu0 %v1920_v27  ;;  %1845 = vmatprep.subr.bf16.mxu1 %v1920_v27 }
  0x7f   : > { %880 = vrot.lane.b32.xlu1 %v575_v21, %s1931_s24  ;;  %v1053_v42 = vor.u32 %v1052_v26, %v1048_v24  ;;  %1808 = vmatpush3.bf16.msra.mxu0 %v1920_v27 }
  0x80   : > { %375 = vrot.lane.b32.xlu0 %v1692_v20, %s1931_s24  ;;  %v1747_v20 = vcombine.low %v2233_v54, %v290_v12  ;;  %1848 = vmatpush3.bf16.msra.mxu1 %v1920_v27 }
  0x82   : > { %v1064_v40 = vshll.u32 %v1747_v20, 16 }
  0x83   : > { %377 = vrot.lane.b32.xlu1 %v1693_v30, %s1931_s24  ;;  %v2251_v30 = vld [vmem:[%s1979_s23] sm:$0xf] }
  0x84   : > { %625 = vrot.lane.b32.xlu0 %v575_v21, %s1932_s25  ;;  %v595_v21 = vrot.slane %v593_v3, 1  ;;  %v1695_v47 = vcombine.low %v2251_v30, %v220_v32  ;;  %v1060_v3 = vor.u32 %v1059_v45, %v1055_v39  ;;  %v1066_v7 = vrot.slane %v1064_v40, 1  ;;  %v1921_v40 = vld [vmem:[%s2585_s2 + $0x8] sm:$0xff]  }
  0x85   : > { %1809 = vmatprep.subr.bf16.mxu0 %v1921_v40  ;;  %1846 = vmatprep.subr.bf16.mxu1 %v1921_v40 }
  0x86   : > { %v2237_v57 = vpop.permute.xlu0 %347  ;;  %v2242_v63 = vpop.permute.xlu1 %353  ;;  %v596_v41 = vor.u32 %v595_v21, %v591_v19  ;;  %v1677_v19 = vcombine.low %v2262_v50, %v2262_v50  ;;  %v472_v21 = vshrl.u32 %v1695_v47, 16  ;;  %1810 = vmatpush3.bf16.msra.mxu0 %v1921_v40  ;;  %1849 = vmatpush3.bf16.msra.mxu1 %v1921_v40 }
  0x87   : > { %882 = vrot.lane.b32.xlu1 %v582_v48, %s1931_s24 }
  0x88   : > { %884 = vrot.lane.b32.xlu0 %v589_v49, %s1931_s24 }
  0x8a   : > { %v350_v14 = vpop.permute.xlu0 %349 }
  0x8b   : > { %1096 = vrot.lane.b32.xlu1 %v1046_v2, %s1932_s25  ;;  %v1062_v2 = vshrl.u32 %v1747_v20, 16 }
  0x8c   : > { %379 = vrot.lane.b32.xlu0 %v1694_v61, %s1931_s24 }
  0x8d   : > { %v2254_v35 = vpop.permute.xlu1 %854  ;;  %v1067_v20 = vor.u32 %v1066_v7, %v1062_v2  ;;  %v639_v7 = vsel %vm633_vm0, %v1996_v6, %v2237_v57 }
  0x8e   : > { %v2256_v38 = vpop.permute.xlu0 %351 }
  0x8f   : > { %627 = vrot.lane.b32.xlu1 %v582_v48, %s1932_s25  ;;  %v474_v48 = vshll.u32 %v1695_v47, 16  ;;  %v642_v47 = vsel %vm633_vm0, %v2003_v9, %v350_v14  ;;  %v1922_v9 = vld [vmem:[%s2585_s2 + $0x10] ss:$0 sps:$4 sm:$0x33]  }
  0x90   : > { %629 = vrot.lane.b32.xlu0 %v589_v49, %s1932_s25  ;;  %v1730_v49 = vcombine.low %v2262_v50, %v256_v55  ;;  %1851 = vmatprep.subr.msk.bf16.mxu0 %vm1372_vm2, %v1922_v9 }
  0x91   : > { %v857_v56 = vpop.permute.xlu1 %856  ;;  %v476_v24 = vrot.slane %v474_v48, 1  ;;  %1852 = vmatprep.subr.msk.bf16.mxu1 %vm1372_vm2, %v1922_v9 }
  0x92   : > { %v600_v61 = vpop.permute.xlu0 %599  ;;  %v945_v26 = vshll.u32 %v1730_v49, 16  ;;  %v1112_v6 = vsel %vm633_vm0, %v1993_v5, %v857_v56  ;;  %v645_v5 = vsel %vm633_vm0, %v2012_v13, %v2256_v38 }
  0x93   : > { %886 = vrot.lane.b32.xlu1 %v596_v41, %s1931_s24  ;;  %v2294_v14 = vsel %vm688_vm1, %v639_v7, %v600_v61 }
  0x94   : > { %1098 = vrot.lane.b32.xlu0 %v1053_v42, %s1932_s25  ;;  %v943_v42 = vshrl.u32 %v1730_v49, 16  ;;  %v947_v45 = vrot.slane %v945_v26, 1  ;;  %v648_v49 = vsel %vm633_vm0, %v2017_v16, %v2242_v63  ;;  %v1109_v16 = vsel %vm633_vm0, %v1982_v0, %v2254_v35 }
  0x95   : > { %v602_v10 = vpop.permute.xlu1 %601 }
  0x96   : > { %v2268_v12 = vpop.permute.xlu0 %858  ;;  %v948_v48 = vor.u32 %v947_v45, %v943_v42 }
  0x97   : > { %1100 = vrot.lane.b32.xlu1 %v1060_v3, %s1932_s25  ;;  %v694_v3 = vsel %vm688_vm1, %v642_v47, %v602_v10  ;;  %v1115_v0 = vsel %vm633_vm0, %v2000_v8, %v2268_v12 }
  0x98   : > { %631 = vrot.lane.b32.xlu0 %v596_v41, %s1932_s25  ;;  %v477_v41 = vor.u32 %v476_v24, %v472_v21  ;;  %v1721_v57 = vcombine.low %v2294_v14, %v694_v3 }
  0x99   : > { %v861_v32 = vpop.permute.xlu1 %860 }
  0x9a   : > { %v1071_v39 = vpop.permute.xlu0 %1070  ;;  %v1118_v13 = vsel %vm633_vm0, %v1985_v1, %v861_v32 }
  0x9b   : > { %1102 = vrot.lane.b32.xlu1 %v1067_v20, %s1932_s25  ;;  %v1374_v20 = vsel %vm1372_vm2, %v1922_v9, 0  ;;  %v2313_v63 = vsel %vm688_vm1, %v1109_v16, %v1071_v39 }
  0x9c   : > { %345 = vrot.lane.b32.xlu0 %v1677_v19, %s1931_s24  ;;  %1812 = vmatpush3.bf16.msra.mxu0 %v1374_v20 }
  0x9d   : > { %v1073_v55 = vpop.permute.xlu1 %1072  ;;  %1850 = vmatpush3.bf16.msra.mxu1 %v1374_v20 }
  0x9e   : > { %v356_v2 = vpop.permute.xlu0 %355  ;;  %v1163_v21 = vsel %vm688_vm1, %v1112_v6, %v1073_v55 }
  0x9f   : > { %852 = vrot.lane.b32.xlu1 %v477_v41, %s1931_s24  ;;  %v1756_v24 = vcombine.low %v2313_v63, %v1163_v21  ;;  %v651_v45 = vsel %vm633_vm0, %v2033_v43, %v356_v2 }
  0xa0   : > { %597 = vrot.lane.b32.xlu0 %v477_v41, %s1932_s25 }
  0xa1   : > { %v604_v10 = vpop.permute.xlu1 %603 }
  0xa2   : > { %v606_v19 = vpop.permute.xlu0 %605  ;;  %v696_v56 = vsel %vm688_vm1, %v645_v5, %v604_v10 }
  0xa3   : > { %v698_v61 = vsel %vm688_vm1, %v648_v49, %v606_v19  ;;  %1068 = vrot.lane.b32.xlu1 %v948_v48, %s1932_s25  ;;  %v2324_v35 = vcombine.low %v694_v3, %v696_v56 }
  0xa4   : > { %775 = vrot.lane.b32.xlu0 %v1721_v57, %s1933_s6  ;;  %v1722_v26 = vcombine.low %v696_v56, %v698_v61 }
  0xa5   : > { %v863_v27 = vpop.permute.xlu1 %862 }
  0xa6   : > { %v1075_v40 = vpop.permute.xlu0 %1074  ;;  %v1121_v1 = vsel %vm633_vm0, %v2043_v53, %v863_v27 }
  0xa7   : > { %1244 = vrot.lane.b32.xlu1 %v1756_v24, %s1933_s6  ;;  %v1165_v41 = vsel %vm688_vm1, %v1115_v0, %v1075_v40 }
  0xa8   : > { %777 = vrot.lane.b32.xlu0 %v1722_v26, %s1933_s6  ;;  %v2335_v12 = vcombine.low %v1163_v21, %v1165_v41 }
  0xa9   : > { %v1077_v38 = vpop.permute.xlu1 %1076 }
  0xaa   : > { %v608_v39 = vpop.permute.xlu0 %607  ;;  %v1167_v42 = vsel %vm688_vm1, %v1118_v13, %v1077_v38 }
  0xab   : > { %v1757_v47 = vcombine.low %v1165_v41, %v1167_v42  ;;  %794 = vrot.lane.b32.xlu1 %v2324_v35, %s1934_s7  ;;  %v700_v8 = vsel %vm688_vm1, %v651_v45, %v608_v39 }
  0xac   : > { %v2339_v7 = vcombine.low %v698_v61, %v700_v8 }
  0xad   : > { %v1079_v32 = vpop.permute.xlu1 %1078  ;;  %1246 = vrot.lane.b32.xlu0 %v1757_v47, %s1933_s6 }
  0xae   : > { %v358_v55 = vpop.permute.xlu0 %357  ;;  %v1169_v3 = vsel %vm688_vm1, %v1121_v1, %v1079_v32 }
  0xaf   : > { %1263 = vrot.lane.b32.xlu1 %v2335_v12, %s1934_s7  ;;  %v2343_v43 = vcombine.low %v1167_v42, %v1169_v3  ;;  %v654_v48 = vsel %vm633_vm0, %v2055_v4, %v358_v55 }
  0xb1   : > { %v865_v2 = vpop.permute.xlu1 %864  ;;  %796 = vrot.lane.b32.xlu0 %v2339_v7, %s1934_s7 }
  0xb2   : > { %v360_v53 = vpop.permute.xlu0 %359  ;;  %v1124_v20 = vsel %vm633_vm0, %v2062_v18, %v865_v2 }
  0xb3   : > { %1265 = vrot.lane.b32.xlu1 %v2343_v43, %s1934_s7  ;;  %v657_v4 = vsel %vm633_vm0, %v2067_v23, %v360_v53 }
  0xb5   : > { %v362_v9 = vpop.permute.xlu1 %361 }
  0xb6   : > { %v610_v49 = vpop.permute.xlu0 %609  ;;  %v660_v56 = vsel %vm633_vm0, %v2071_v25, %v362_v9 }
  0xb7   : > { %v702_v6 = vsel %vm688_vm1, %v654_v48, %v610_v49 }
  0xb8   : > { %v1723_v57 = vcombine.low %v700_v8, %v702_v6 }
  0xb9   : > { %v867_v10 = vpop.permute.xlu1 %866 }
  0xba   : > { %v869_v19 = vpop.permute.xlu0 %868  ;;  %779 = vrot.lane.b32.xlu0 %v1723_v57, %s1933_s6  ;;  %v1127_v13 = vsel %vm633_vm0, %v2079_v31, %v867_v10 }
  0xbb   : > { %v1130_v41 = vsel %vm633_vm0, %v2089_v37, %v869_v19 }
  0xbd   : > { %v1081_v21 = vpop.permute.xlu1 %1080 }
  0xbe   : > { %v364_v61 = vpop.permute.xlu0 %363  ;;  %v1171_v16 = vsel %vm688_vm1, %v1124_v20, %v1081_v21 }
  0xbf   : > { %v1758_v5 = vcombine.low %v1169_v3, %v1171_v16  ;;  %v663_v47 = vsel %vm633_vm0, %v2095_v44, %v364_v61 }
  0xc1   : > { %v612_v24 = vpop.permute.xlu1 %611  ;;  %1248 = vrot.lane.b32.xlu1 %v1758_v5, %s1933_s6 }
  0xc2   : > { %v614_v26 = vpop.permute.xlu0 %613  ;;  %v704_v27 = vsel %vm688_vm1, %v657_v4, %v612_v24 }
  0xc3   : > { %v706_v40 = vsel %vm688_vm1, %v660_v56, %v614_v26  ;;  %v2363_v18 = vcombine.low %v702_v6, %v704_v27 }
  0xc4   : > { %v1724_v0 = vcombine.low %v704_v27, %v706_v40 }
  0xc5   : > { %v871_v38 = vpop.permute.xlu1 %870  ;;  %798 = vrot.lane.b32.xlu1 %v2363_v18, %s1934_s7 }
  0xc6   : > { %v1083_v23 = vpop.permute.xlu0 %1082  ;;  %781 = vrot.lane.b32.xlu0 %v1724_v0, %s1933_s6  ;;  %v1133_v32 = vsel %vm633_vm0, %v2106_v58, %v871_v38 }
  0xc7   : > { %v1173_v25 = vsel %vm688_vm1, %v1127_v13, %v1083_v23 }
  0xc8   : > { %v2371_v39 = vcombine.low %v1171_v16, %v1173_v25 }
  0xc9   : > { %v1085_v42 = vpop.permute.xlu1 %1084 }
  0xca   : > { %v616_v45 = vpop.permute.xlu0 %615  ;;  %1267 = vrot.lane.b32.xlu1 %v2371_v39, %s1934_s7  ;;  %v1175_v31 = vsel %vm688_vm1, %v1130_v41, %v1085_v42 }
  0xcb   : > { %v1759_v8 = vcombine.low %v1173_v25, %v1175_v31  ;;  %v708_v1 = vsel %vm688_vm1, %v663_v47, %v616_v45 }
  0xcc   : > { %v2385_v2 = vcombine.low %v706_v40, %v708_v1 }
  0xcd   : > { %v1087_v55 = vpop.permute.xlu1 %1086  ;;  %1250 = vrot.lane.b32.xlu0 %v1759_v8, %s1933_s6 }
  0xce   : > { %v366_v37 = vpop.permute.xlu0 %365  ;;  %v1177_v3 = vsel %vm688_vm1, %v1133_v32, %v1087_v55 }
  0xcf   : > { %v2387_v53 = vcombine.low %v1175_v31, %v1177_v3  ;;  %v666_v58 = vsel %vm633_vm0, %v2119_v17, %v366_v37 }
  0xd1   : > { %v873_v48 = vpop.permute.xlu1 %872  ;;  %800 = vrot.lane.b32.xlu0 %v2385_v2, %s1934_s7  ;;  %1269 = vrot.lane.b32.xlu1 %v2387_v53, %s1934_s7 }
  0xd2   : > { %v368_v44 = vpop.permute.xlu0 %367  ;;  %v1136_v20 = vsel %vm633_vm0, %v2126_v28, %v873_v48 }
  0xd3   : > { %v669_v17 = vsel %vm633_vm0, %v2129_v29, %v368_v44 }
  0xd5   : > { %v370_v9 = vpop.permute.xlu1 %369 }
  0xd6   : > { %v618_v49 = vpop.permute.xlu0 %617  ;;  %v672_v4 = vsel %vm633_vm0, %v2135_v36, %v370_v9 }
  0xd7   : > { %v710_v6 = vsel %vm688_vm1, %v666_v58, %v618_v49 }
  0xd8   : > { %v1725_v57 = vcombine.low %v708_v1, %v710_v6 }
  0xd9   : > { %v875_v10 = vpop.permute.xlu1 %874 }
  0xda   : > { %v877_v19 = vpop.permute.xlu0 %876  ;;  %783 = vrot.lane.b32.xlu0 %v1725_v57, %s1933_s6  ;;  %v1139_v0 = vsel %vm633_vm0, %v2144_v46, %v875_v10 }
  0xdb   : > { %v1142_v23 = vsel %vm633_vm0, %v2153_v51, %v877_v19 }
  0xdd   : > { %v1089_v21 = vpop.permute.xlu1 %1088 }
  0xde   : > { %v372_v61 = vpop.permute.xlu0 %371  ;;  %v1179_v16 = vsel %vm688_vm1, %v1136_v20, %v1089_v21 }
  0xdf   : > { %v1760_v5 = vcombine.low %v1177_v3, %v1179_v16  ;;  %v675_v42 = vsel %vm633_vm0, %v2159_v59, %v372_v61 }
  0xe1   : > { %v620_v56 = vpop.permute.xlu1 %619  ;;  %1252 = vrot.lane.b32.xlu1 %v1760_v5, %s1933_s6 }
  0xe2   : > { %v622_v24 = vpop.permute.xlu0 %621  ;;  %v712_v26 = vsel %vm688_vm1, %v669_v17, %v620_v56 }
  0xe3   : > { %v714_v27 = vsel %vm688_vm1, %v672_v4, %v622_v24  ;;  %v2407_v28 = vcombine.low %v710_v6, %v712_v26 }
  0xe4   : > { %v1726_v40 = vcombine.low %v712_v26, %v714_v27 }
  0xe5   : > { %v879_v13 = vpop.permute.xlu1 %878  ;;  %802 = vrot.lane.b32.xlu1 %v2407_v28, %s1934_s7 }
  0xe6   : > { %v1091_v29 = vpop.permute.xlu0 %1090  ;;  %785 = vrot.lane.b32.xlu0 %v1726_v40, %s1933_s6  ;;  %v1145_v47 = vsel %vm633_vm0, %v2169_v15, %v879_v13 }
  0xe7   : > { %v1181_v36 = vsel %vm688_vm1, %v1139_v0, %v1091_v29 }
  0xe8   : > { %v2415_v38 = vcombine.low %v1179_v16, %v1181_v36 }
  0xe9   : > { %v1093_v25 = vpop.permute.xlu1 %1092 }
  0xea   : > { %v624_v41 = vpop.permute.xlu0 %623  ;;  %1271 = vrot.lane.b32.xlu1 %v2415_v38, %s1934_s7  ;;  %v1183_v46 = vsel %vm688_vm1, %v1142_v23, %v1093_v25 }
  0xeb   : > { %v1761_v45 = vcombine.low %v1181_v36, %v1183_v46  ;;  %v716_v31 = vsel %vm688_vm1, %v675_v42, %v624_v41 }
  0xec   : > { %v2429_v32 = vcombine.low %v714_v27, %v716_v31 }
  0xed   : > { %v1095_v8 = vpop.permute.xlu1 %1094  ;;  %1254 = vrot.lane.b32.xlu0 %v1761_v45, %s1933_s6 }
  0xee   : > { %v374_v51 = vpop.permute.xlu0 %373  ;;  %v1185_v1 = vsel %vm688_vm1, %v1145_v47, %v1095_v8 }
  0xef   : > { %v2431_v55 = vcombine.low %v1183_v46, %v1185_v1  ;;  %v678_v15 = vsel %vm633_vm0, %v2180_v34, %v374_v51 }
  0xf1   : > { %v881_v37 = vpop.permute.xlu1 %880  ;;  %804 = vrot.lane.b32.xlu0 %v2429_v32, %s1934_s7  ;;  %1273 = vrot.lane.b32.xlu1 %v2431_v55, %s1934_s7 }
  0xf2   : > { %v376_v59 = vpop.permute.xlu0 %375  ;;  %v1148_v6 = vsel %vm633_vm0, %v2190_v52, %v881_v37 }
  0xf3   : > { %v681_v34 = vsel %vm633_vm0, %v2195_v60, %v376_v59 }
  0xf5   : > { %v378_v3 = vpop.permute.xlu1 %377 }
  0xf6   : > { %v626_v48 = vpop.permute.xlu0 %625  ;;  %v684_v21 = vsel %vm633_vm0, %v2199_v62, %v378_v3 }
  0xf7   : > { %v718_v44 = vsel %vm688_vm1, %v678_v15, %v626_v48 }
  0xf8   : > { %v1727_v58 = vcombine.low %v716_v31, %v718_v44 }
  0xf9   : > { %v883_v9 = vpop.permute.xlu1 %882 }
  0xfa   : > { %v885_v49 = vpop.permute.xlu0 %884  ;;  %787 = vrot.lane.b32.xlu0 %v1727_v58, %s1933_s6  ;;  %v1151_v56 = vsel %vm633_vm0, %v2207_v11, %v883_v9 }
  0xfb   : > { %v1154_v27 = vsel %vm633_vm0, %v2217_v22, %v885_v49 }
  0xfd   : > { %v1097_v57 = vpop.permute.xlu1 %1096 }
  0xfe   : > { %v380_v10 = vpop.permute.xlu0 %379  ;;  %v1187_v19 = vsel %vm688_vm1, %v1148_v6, %v1097_v57 }
  0xff   : > { %v1762_v20 = vcombine.low %v1185_v1, %v1187_v19  ;;  %v687_v13 = vsel %vm633_vm0, %v2223_v33, %v380_v10 }
 0x101   : > { %v628_v61 = vpop.permute.xlu1 %627  ;;  %1256 = vrot.lane.b32.xlu1 %v1762_v20, %s1933_s6 }
 0x102   : > { %v630_v16 = vpop.permute.xlu0 %629  ;;  %v720_v5 = vsel %vm688_vm1, %v681_v34, %v628_v61 }
 0x103   : > { %v722_v17 = vsel %vm688_vm1, %v684_v21, %v630_v16  ;;  %v2451_v52 = vcombine.low %v718_v44, %v720_v5 }
 0x104   : > { %v1728_v4 = vcombine.low %v720_v5, %v722_v17 }
 0x105   : > { %v887_v24 = vpop.permute.xlu1 %886  ;;  %806 = vrot.lane.b32.xlu1 %v2451_v52, %s1934_s7 }
 0x106   : > { %v1099_v60 = vpop.permute.xlu0 %1098  ;;  %789 = vrot.lane.b32.xlu0 %v1728_v4, %s1933_s6  ;;  %v1157_v23 = vsel %vm633_vm0, %v2233_v54, %v887_v24 }
 0x107   : > { %v1189_v62 = vsel %vm688_vm1, %v1151_v56, %v1099_v60 }
 0x108   : > { %v2459_v26 = vcombine.low %v1187_v19, %v1189_v62 }
 0x109   : > { %v1101_v40 = vpop.permute.xlu1 %1100 }
 0x10a   : > { %v632_v0 = vpop.permute.xlu0 %631  ;;  %1275 = vrot.lane.b32.xlu1 %v2459_v26, %s1934_s7  ;;  %v1191_v11 = vsel %vm688_vm1, %v1154_v27, %v1101_v40 }
 0x10b   : > { %v1763_v29 = vcombine.low %v1189_v62, %v1191_v11  ;;  %v724_v36 = vsel %vm688_vm1, %v687_v13, %v632_v0 }
 0x10c   : > { %v1729_v46 = vcombine.low %v722_v17, %v724_v36 }
 0x10d   : > { %v1103_v25 = vpop.permute.xlu1 %1102  ;;  %1258 = vrot.lane.b32.xlu0 %v1763_v29, %s1933_s6 }
 0x10e   : > { %v346_v22 = vpop.permute.xlu0 %345  ;;  %v1193_v41 = vsel %vm688_vm1, %v1157_v23, %v1103_v25 }
 0x10f   : > { %v1764_v42 = vcombine.low %v1191_v11, %v1193_v41  ;;  %v636_v31 = vsel %vm633_vm0, %v2251_v30, %v346_v22 }
 0x111   : > { %808 = vrot.lane.b32.xlu0 %v1729_v46, %s1934_s7  ;;  %1277 = vrot.lane.b32.xlu1 %v1764_v42, %s1934_s7  ;;  %v853_v45 = vpop.permute.xlu1 %852 }
 0x112   : > { %v598_v33 = vpop.permute.xlu0 %597  ;;  %v1106_v51 = vsel %vm633_vm0, %v2262_v50, %v853_v45 }
 0x113   : > { %v690_v54 = vsel %vm688_vm1, %v636_v31, %v598_v33 }
 0x114   : > { %v1713_v1 = vcombine.low %v690_v54, %v2294_v14 }
 0x115   : > { %v1069_v47 = vpop.permute.xlu1 %1068 }
 0x116   : > { %v776_v8 = vpop.permute.xlu0 %775  ;;  %v1159_v15 = vsel %vm688_vm1, %v1106_v51, %v1069_v47 }
 0x117   : > { %v1748_v3 = vcombine.low %v1159_v15, %v2313_v63  ;;  %v813_v30 = vsel %vm810_vm3, %v1713_v1, %v776_v8 }
 0x119   : > { %v1245_v37 = vpop.permute.xlu1 %1244 }
 0x11a   : > { %v778_v59 = vpop.permute.xlu0 %777  ;;  %v1281_v50 = vsel %vm810_vm3, %v1748_v3, %v1245_v37 }
 0x11b   : > { %v816_v49 = vsel %vm810_vm3, %v2324_v35, %v778_v59 }
 0x11d   : > { %v795_v48 = vpop.permute.xlu1 %794 }
 0x11e   : > { %v837_v44 = vsel %vm835_vm4, %v813_v30, %v795_v48 }
 0x11f   : > { %v1247_v58 = vpop.permute.xlu0 %1246  ;;  %1813 = vmatprep.mubr.msk.bf16.mxu0 %vm1339_vm5, %v837_v44 }
 0x120   : > { %v1284_v57 = vsel %vm810_vm3, %v2335_v12, %v1247_v58 }
 0x121   : > { %v1264_v14 = vpop.permute.xlu1 %1263 }
 0x122   : > { %v1304_v9 = vsel %vm835_vm4, %v1281_v50, %v1264_v14 }
 0x123   : > { %v797_v6 = vpop.permute.xlu0 %796  ;;  %1829 = vmatprep.mubr.msk.bf16.mxu1 %vm1339_vm5, %v1304_v9 }
 0x124   : > { %v839_v63 = vsel %vm835_vm4, %v816_v49, %v797_v6  ;;  %v2548_v6 = vld [vmem:[%s2586_s3] ss:$0 sm:$0xff] }
 0x125   : > { %1814 = vmatmul.mubr.msk.bf16.vlgmr.msra.gmra.mrb[0].mxu0 %vm1339_vm5, %v839_v63  ;;  %v1266_v10 = vpop.permute.xlu1 %1265 }
 0x126   : > { %v1306_v19 = vsel %vm835_vm4, %v1284_v57, %v1266_v10 }
 0x127   : > { %1830 = vmatmul.mubr.msk.bf16.vlgmr.msra.gmra.mrb[0].mxu1 %vm1339_vm5, %v1306_v19 }
 0x12c   : > { %v780_v34 = vpop.permute.xlu0 %779 }
 0x12d   : > { %v819_v35 = vsel %vm810_vm3, %v2339_v7, %v780_v34 }
 0x133   : > { %v1249_v20 = vpop.permute.xlu1 %1248 }
 0x134   : > { %v1287_v12 = vsel %vm810_vm3, %v2343_v43, %v1249_v20 }
 0x137   : > { %v799_v21 = vpop.permute.xlu1 %798 }
 0x138   : > { %v841_v61 = vsel %vm835_vm4, %v819_v35, %v799_v21  ;;  %v782_v16 = vpop.permute.xlu0 %781 }
 0x139   : > { %1817 = vmatprep.mubr.msk.bf16.mxu0 %vm1339_vm5, %v841_v61  ;;  %v822_v56 = vsel %vm810_vm3, %v2363_v18, %v782_v16 }
 0x13c   : > { %v1268_v5 = vpop.permute.xlu1 %1267 }
 0x13d   : > { %v1308_v17 = vsel %vm835_vm4, %v1287_v12, %v1268_v5 }
 0x13e   : > { %1833 = vmatprep.mubr.msk.bf16.mxu1 %vm1339_vm5, %v1308_v17 }
 0x13f   : > { %v1251_v4 = vpop.permute.xlu0 %1250 }
 0x140   : > { %v1290_v7 = vsel %vm810_vm3, %v2371_v39, %v1251_v4 }
 0x143   : > { %v801_v24 = vpop.permute.xlu0 %800  ;;  %v1270_v60 = vpop.permute.xlu1 %1269 }
 0x144   : > { %v843_v62 = vsel %vm835_vm4, %v822_v56, %v801_v24  ;;  %v1310_v27 = vsel %vm835_vm4, %v1290_v7, %v1270_v60 }
 0x145   : > { %1818 = vmatmul.mubr.msk.bf16.gmra.mrb[4].mxu0 %vm1339_vm5, %v843_v62  ;;  %1834 = vmatmul.mubr.msk.bf16.gmra.mrb[4].mxu1 %vm1339_vm5, %v1310_v27 }
 0x14c   : > { %v784_v40 = vpop.permute.xlu0 %783 }
 0x14d   : > { %v825_v0 = vsel %vm810_vm3, %v2385_v2, %v784_v40 }
 0x153   : > { %v1253_v43 = vpop.permute.xlu1 %1252 }
 0x154   : > { %v1293_v39 = vsel %vm810_vm3, %v2387_v53, %v1253_v43 }
 0x157   : > { %v803_v11 = vpop.permute.xlu1 %802 }
 0x158   : > { %v845_v18 = vsel %vm835_vm4, %v825_v0, %v803_v11  ;;  %v786_v13 = vpop.permute.xlu0 %785 }
 0x159   : > { %1821 = vmatprep.mubr.msk.bf16.mxu0 %vm1339_vm5, %v845_v18  ;;  %v828_v25 = vsel %vm810_vm3, %v2407_v28, %v786_v13 }
 0x15c   : > { %v1272_v29 = vpop.permute.xlu1 %1271 }
 0x15d   : > { %v1312_v36 = vsel %vm835_vm4, %v1293_v39, %v1272_v29 }
 0x15e   : > { %1837 = vmatprep.mubr.msk.bf16.mxu1 %vm1339_vm5, %v1312_v36 }
 0x15f   : > { %v1255_v23 = vpop.permute.xlu0 %1254 }
 0x160   : > { %v1296_v2 = vsel %vm810_vm3, %v2415_v38, %v1255_v23 }
 0x163   : > { %v805_v22 = vpop.permute.xlu0 %804  ;;  %v1274_v41 = vpop.permute.xlu1 %1273 }
 0x164   : > { %v847_v46 = vsel %vm835_vm4, %v828_v25, %v805_v22  ;;  %v1314_v42 = vsel %vm835_vm4, %v1296_v2, %v1274_v41 }
 0x165   : > { %1822 = vmatmul.mubr.msk.bf16.gmra.mrb[8].mxu0 %vm1339_vm5, %v847_v46  ;;  %1838 = vmatmul.mubr.msk.bf16.gmra.mrb[8].mxu1 %vm1339_vm5, %v1314_v42 }
 0x16c   : > { %v788_v45 = vpop.permute.xlu0 %787 }
 0x16d   : > { %v831_v33 = vsel %vm810_vm3, %v2429_v32, %v788_v45 }
 0x173   : > { %v1257_v53 = vpop.permute.xlu1 %1256 }
 0x174   : > { %v1299_v38 = vsel %vm810_vm3, %v2431_v55, %v1257_v53 }
 0x177   : > { %v807_v31 = vpop.permute.xlu1 %806 }
 0x178   : > { %v849_v28 = vsel %vm835_vm4, %v831_v33, %v807_v31  ;;  %v790_v47 = vpop.permute.xlu0 %789 }
 0x179   : > { %1825 = vmatprep.mubr.msk.bf16.mxu0 %vm1339_vm5, %v849_v28  ;;  %v834_v1 = vsel %vm810_vm3, %v2451_v52, %v790_v47 }
 0x17c   : > { %v1276_v8 = vpop.permute.xlu1 %1275 }
 0x17d   : > { %v1316_v54 = vsel %vm835_vm4, %v1299_v38, %v1276_v8 }
 0x17e   : > { %1841 = vmatprep.mubr.msk.bf16.mxu1 %vm1339_vm5, %v1316_v54 }
 0x17f   : > { %v1259_v51 = vpop.permute.xlu0 %1258 }
 0x180   : > { %v1302_v32 = vsel %vm810_vm3, %v2459_v26, %v1259_v51 }
 0x183   : > { %v809_v37 = vpop.permute.xlu0 %808  ;;  %v1278_v59 = vpop.permute.xlu1 %1277 }
 0x184   : > { %v851_v15 = vsel %vm835_vm4, %v834_v1, %v809_v37  ;;  %v1318_v3 = vsel %vm835_vm4, %v1302_v32, %v1278_v59 }
 0x185   : > { %1826 = vmatmul.mubr.msk.bf16.gmra.mrb[12].mxu0 %vm1339_vm5, %v851_v15  ;;  %1842 = vmatmul.mubr.msk.bf16.gmra.mrb[12].mxu1 %vm1339_vm5, %v1318_v3 }
 0x1f8   : > { %v1815_v55 = vpop.f32.mrb[0].mxu0 }
 0x1f9   : > { %v1410_v30 = vpop.f32.mrb[1].mxu0 }
 0x1fa   : > { %v1816_v48 = vpop.f32.mrb[2].mxu0  ;;  %v1831_v44 = vpop.f32.mrb[0].mxu1 }
 0x1fb   : > { %v1539_v58 = vmax.f32 %v1815_v55, %v1831_v44  ;;  %v1413_v52 = vpop.f32.mrb[3].mxu0  ;;  %v1474_v50 = vpop.f32.mrb[1].mxu1 }
 0x1fc   : > { %v1537_v14 = vmax.f32 %v1410_v30, %v1474_v50  ;;  %v1832_v26 = vpop.f32.mrb[2].mxu1 }
 0x1fd   : > { %v1540_v9 = vmax.f32 %v1816_v48, %v1832_v26  ;;  %v1477_v49 = vpop.f32.mrb[3].mxu1 }
 0x1fe   : > { %v1538_v63 = vmax.f32 %v1413_v52, %v1477_v49 }
 0x1ff   : > { %v1554_v57 = vmax.f32 %v1539_v58, %v1540_v9 }
 0x200   : > { %v1553_v10 = vmax.f32 %v1537_v14, %v1538_v63 }
 0x201   : > { %v1569_v19 = vadd.f32 %v2548_v6, %v1554_v57 }
 0x202   : > { %v1568_v20 = vadd.f32 %v2548_v6, %v1553_v10 }
 0x203   : > { %v1577_v34 = vmax.f32 %v1569_v19, 0.0 }
 0x204   : > { %v1576_v35 = vmax.f32 %v1568_v20, 0.0 }
 0x205   : > { %v1585_v21 = vpack.c.bf16 %v1577_v34, %v1577_v34 }
 0x206   : > { %v1584_v61 = vpack.c.bf16 %v1576_v35, %v1576_v35 }
 0x207   : > { %1594 = vst.msk [vmem:[%s2556_s13 + $0x4] sm:$0xf] %vm1592_vm6, %v1585_v21 }
 0x208   : > { %1593 = vst.msk [vmem:[%s2556_s13] sm:$0xf] %vm1592_vm6, %v1584_v61 }
 0x218   : > { %v1819_v12 = vpop.f32.mrb[4].mxu0  ;;  %v1835_v16 = vpop.f32.mrb[4].mxu1 }
 0x219   : > { %v1543_v5 = vmax.f32 %v1819_v12, %v1835_v16  ;;  %v1426_v17 = vpop.f32.mrb[5].mxu0  ;;  %v1490_v4 = vpop.f32.mrb[5].mxu1 }
 0x21a   : > { %v1541_v56 = vmax.f32 %v1426_v17, %v1490_v4  ;;  %v1820_v7 = vpop.f32.mrb[6].mxu0  ;;  %v1836_v24 = vpop.f32.mrb[6].mxu1 }
 0x21b   : > { %v1544_v60 = vmax.f32 %v1820_v7, %v1836_v24  ;;  %v1429_v62 = vpop.f32.mrb[7].mxu0  ;;  %v1493_v27 = vpop.f32.mrb[7].mxu1 }
 0x21c   : > { %v1542_v43 = vmax.f32 %v1429_v62, %v1493_v27 }
 0x21d   : > { %v1556_v40 = vmax.f32 %v1543_v5, %v1544_v60 }
 0x21e   : > { %v1555_v0 = vmax.f32 %v1541_v56, %v1542_v43 }
 0x21f   : > { %v1571_v11 = vadd.f32 %v2548_v6, %v1556_v40 }
 0x220   : > { %v1570_v18 = vadd.f32 %v2548_v6, %v1555_v0 }
 0x221   : > { %v1579_v39 = vmax.f32 %v1571_v11, 0.0 }
 0x222   : > { %v1578_v13 = vmax.f32 %v1570_v18, 0.0 }
 0x223   : > { %v1587_v29 = vpack.c.bf16 %v1579_v39, %v1579_v39 }
 0x224   : > { %v1586_v36 = vpack.c.bf16 %v1578_v13, %v1578_v13 }
 0x225   : > { %1596 = vst.msk [vmem:[%s2556_s13 + $0xc] sm:$0xf] %vm1592_vm6, %v1587_v29 }
 0x226   : > { %1595 = vst.msk [vmem:[%s2556_s13 + $0x8] sm:$0xf] %vm1592_vm6, %v1586_v36 }
 0x238   : > { %v1823_v23 = vpop.f32.mrb[8].mxu0  ;;  %v1839_v25 = vpop.f32.mrb[8].mxu1 }
 0x239   : > { %v1547_v2 = vmax.f32 %v1823_v23, %v1839_v25  ;;  %v1442_v22 = vpop.f32.mrb[9].mxu0  ;;  %v1506_v41 = vpop.f32.mrb[9].mxu1 }
 0x23a   : > { %v1545_v46 = vmax.f32 %v1442_v22, %v1506_v41  ;;  %v1824_v42 = vpop.f32.mrb[10].mxu0  ;;  %v1840_v53 = vpop.f32.mrb[10].mxu1 }
 0x23b   : > { %v1548_v45 = vmax.f32 %v1824_v42, %v1840_v53  ;;  %v1445_v33 = vpop.f32.mrb[11].mxu0  ;;  %v1509_v31 = vpop.f32.mrb[11].mxu1 }
 0x23c   : > { %v1546_v28 = vmax.f32 %v1445_v33, %v1509_v31 }
 0x23d   : > { %v1558_v38 = vmax.f32 %v1547_v2, %v1548_v45 }
 0x23e   : > { %v1557_v47 = vmax.f32 %v1545_v46, %v1546_v28 }
 0x23f   : > { %v1573_v8 = vadd.f32 %v2548_v6, %v1558_v38 }
 0x240   : > { %v1572_v54 = vadd.f32 %v2548_v6, %v1557_v47 }
 0x241   : > { %v1581_v51 = vmax.f32 %v1573_v8, 0.0 }
 0x242   : > { %v1580_v1 = vmax.f32 %v1572_v54, 0.0 }
 0x243   : > { %v1589_v32 = vpack.c.bf16 %v1581_v51, %v1581_v51 }
 0x244   : > { %v1588_v37 = vpack.c.bf16 %v1580_v1, %v1580_v1 }
 0x245   : > { %1598 = vst.msk [vmem:[%s2556_s13 + $0x14] sm:$0xf] %vm1592_vm6, %v1589_v32 }
 0x246   : > { %1597 = vst.msk [vmem:[%s2556_s13 + $0x10] sm:$0xf] %vm1592_vm6, %v1588_v37 }
 0x258   : > { %v1827_v59 = vpop.f32.mrb[12].mxu0  ;;  %v1843_v15 = vpop.f32.mrb[12].mxu1 }
 0x259   : > { %v1551_v3 = vmax.f32 %v1827_v59, %v1843_v15  ;;  %v1458_v55 = vpop.f32.mrb[13].mxu0  ;;  %v1522_v30 = vpop.f32.mrb[13].mxu1 }
 0x25a   : > { %v1549_v48 = vmax.f32 %v1458_v55, %v1522_v30  ;;  %v1828_v44 = vpop.f32.mrb[14].mxu0  ;;  %v1844_v58 = vpop.f32.mrb[14].mxu1 }
 0x25b   : > { %v1552_v52 = vmax.f32 %v1828_v44, %v1844_v58  ;;  %v1461_v50 = vpop.f32.mrb[15].mxu0  ;;  %v1525_v14 = vpop.f32.mrb[15].mxu1 }
 0x25c   : > { %v1550_v26 = vmax.f32 %v1461_v50, %v1525_v14 }
 0x25d   : > { %v1560_v9 = vmax.f32 %v1551_v3, %v1552_v52 }
 0x25e   : > { %v1559_v49 = vmax.f32 %v1549_v48, %v1550_v26 }
 0x25f   : > { %v1575_v63 = vadd.f32 %v2548_v6, %v1560_v9 }
 0x260   : > { %v1574_v57 = vadd.f32 %v2548_v6, %v1559_v49 }
 0x261   : > { %v1583_v10 = vmax.f32 %v1575_v63, 0.0 }
 0x262   : > { %v1582_v19 = vmax.f32 %v1574_v57, 0.0 }
 0x263   : > { %v1591_v20 = vpack.c.bf16 %v1583_v10, %v1583_v10 }
 0x264   : > { %v1590_v34 = vpack.c.bf16 %v1582_v19, %v1582_v19 }
 0x265   : > { %1600 = vst.msk [vmem:[%s2556_s13 + $0x1c] sm:$0xf] %vm1592_vm6, %v1591_v20 }
 0x266   : > { %1599 = vst.msk [vmem:[%s2556_s13 + $0x18] sm:$0xf] %vm1592_vm6, %v1590_v34 }
 0x267 PF: > { %s14_s15 = sadd.s32 1, %s1929_s15  }
 0x268   : > { %p11_p4 = scmp.ge.s32.totalorder %s14_s15, 4  }
 0x26a   :  { %13 = sbr.rel (!%p11_p4) target bundleno = 1 (0x1), region = 69 }

</bundles_post_ra>
